<compile_context>
chip_gen: v5e
topology: v5e:2x2
jax: 0.10.0
libtpu: 0.0.40
codegen_flags: <defaults>
</compile_context>

<pallas_src>
import functools
import math

import jax
import jax.numpy as jnp
from jax import lax
from jax.experimental import pallas as pl
from jax.experimental.pallas import tpu as pltpu


# ----------------------------- kernel helpers ------------------------------


def _layer_norm(x, gamma, beta, eps=1e-5):
    # Matches torch.nn.LayerNorm (biased variance over last dim, eps=1e-5).
    mu = jnp.mean(x, axis=-1, keepdims=True)
    xc = x - mu
    var = jnp.mean(xc * xc, axis=-1, keepdims=True)
    return xc * lax.rsqrt(var + eps) * gamma + beta


def _graph_gat_kernel(vg_ref, adj_ref,
                      wqkv_ref, ln_g_ref, ln_b_ref,
                      w1_ref, b1_ref, alpha_ref, w2_ref, b2_ref,
                      out_ref, *, num_layers, num_heads, graphs_per_step,
                      n_pad, hdim):
    """All GAT layers for G padded graphs processed in one grid step.

    vg_ref   : (G, N_pad, D)       node states
    adj_ref  : (G, N_pad, N_pad)   int8 adjacency (nonzero == edge)
    wqkv_ref : (L, D, 3D)          fused Q|K|V projections (Q pre-scaled by 1/sqrt(D))
    """
    G, N, D = graphs_per_step, n_pad, hdim
    C = D // num_heads

    x = vg_ref[...].reshape(G * N, D)                         # (G*N, D) matmul slab
    # Additive attention bias built in-kernel from the int8 adjacency (saves the
    # f32 N^2 HBM operand).  Large-finite so fully-masked padded rows stay NaN-free.
    adjf = adj_ref[...].astype(jnp.float32)                   # (G, N, N)
    bias = jnp.where(adjf == 0.0, jnp.float32(-1e30), jnp.float32(0.0))

    for l in range(num_layers):          # static unrolled loop over fused layers
        # ---- MultiHeadAttention: one fused QKV projection per layer ----------
        qkv = jnp.dot(x, wqkv_ref[l], preferred_element_type=jnp.float32)  # (G*N, 3D)
        qkv = qkv.reshape(G, N, 3 * D)
        ctx_heads = []
        for hh in range(num_heads):      # static unrolled loop over heads
            q_h = qkv[:, :, hh * C:(hh + 1) * C]                       # (G, N, C)
            k_h = qkv[:, :, D + hh * C:D + (hh + 1) * C]
            v_h = qkv[:, :, 2 * D + hh * C:2 * D + (hh + 1) * C]
            # softmax scale already folded into wq at pack time
            s = jnp.einsum('gqc,gkc->gqk', q_h, k_h,
                           preferred_element_type=jnp.float32) + bias   # (G, N, N)
            m = jnp.max(s, axis=-1, keepdims=True)
            p = jnp.exp(s - m)
            denom = jnp.sum(p, axis=-1, keepdims=True)
            attn = p * pl.reciprocal(denom, approx=True)     # EUP slot, not VALU
            ctx_heads.append(jnp.einsum('gqk,gkc->gqc', attn, v_h,
                                        preferred_element_type=jnp.float32))
        ctx = jnp.concatenate(ctx_heads, axis=-1).reshape(G * N, D)
        attn_out = ctx + x               # residual inside MultiHeadAttention

        # ---- Block: t = ln_1(q); q = l2(prelu(l1(t))); out = ln_1(q + t) ------
        g = ln_g_ref[l]                  # (1, D)
        b = ln_b_ref[l]
        t = _layer_norm(attn_out, g, b)
        h1 = jnp.dot(t, w1_ref[l], preferred_element_type=jnp.float32) + b1_ref[l]
        alpha = alpha_ref[l]
        h1 = jnp.where(h1 >= 0.0, h1, alpha * h1)            # PReLU, per-channel alpha
        q = jnp.dot(h1, w2_ref[l], preferred_element_type=jnp.float32) + b2_ref[l]
        x = _layer_norm(q + t, g, b)

    out_ref[...] = x.reshape(G, N, D)


# ----------------------------- parameter packing ---------------------------


def pack_params(params, key_dim):
    """Stack per-layer weights; fuse Q|K|V and fold 1/sqrt(key_dim) into Q."""
    layers = params["layers"]
    scale = 1.0 / math.sqrt(float(key_dim))

    def stack(name):
        return jnp.stack([lp[name] for lp in layers], axis=0)

    wq = stack("wq") * jnp.float32(scale)                     # fold softmax scale
    wqkv = jnp.concatenate([wq, stack("wk"), stack("wv")], axis=-1)   # (L, D, 3D)

    return dict(wqkv=wqkv,
                ln_g=stack("ln_g"), ln_b=stack("ln_b"),
                w1=stack("w1"), b1=stack("b1"), alpha=stack("alpha"),
                w2=stack("w2"), b2=stack("b2"))


# ----------------------------- sizing helpers -------------------------------


def _choose_graphs_per_step(batch, n_pad, target_rows=256):
    """Pack enough graphs per step to fill the MXU M dim, keep >= 2 grid steps."""
    g = max(1, min(batch, target_rows // max(n_pad, 1)))
    if batch >= 2:
        g = min(g, (batch + 1) // 2)    # ensure >= 2 grid steps (v7x megacore split)
    return max(1, g)


def _vmem_limit_bytes(G, n_pad, D, L):
    f32 = 4
    io = 2 * 2 * (G * n_pad * D * f32)            # vg + out blocks, double-buffered
    io += 2 * (G * n_pad * n_pad)                 # int8 adjacency, double-buffered
    weights = L * (11 * D * D + 16 * D) * f32     # resident stacked weights
    temps = G * n_pad * (4 * n_pad + 15 * D) * f32  # scores/probs + qkv/ffn temporaries
    total = io + 2 * weights + temps + (2 << 20)  # headroom for compiler scratch
    return int(min(max(total, 8 << 20), 64 << 20))


# ----------------------------- graph_encoder -------------------------------


def graph_encoder_forward(params, ents, rels, adjs, ent_embed_table,
                          root_token=46, num_heads=4):
    D = params["renc"].shape[1]
    L = len(params["layers"])

    # ---- trace-time glue: gather embeddings, concat, pad, stack (plain JAX) --
    vgraphs, elens = [], []
    for i, adj in enumerate(adjs):
        if len(ents[i]) > 0:
            venc = ent_embed_table[ents[i]]                 # (n_e, D)
            vrel = params["renc"][rels[i]]                  # (n_r, D)
            root = params["renc"][root_token][None, :]      # (1, D) (hard-coded 46 in torch)
            vg = jnp.concatenate([venc, vrel, root], axis=0)
        else:
            vg = params["renc"][rels[i]]                    # matches torch else-branch (no root)
        vgraphs.append(vg.astype(jnp.float32))
        elens.append(vg.shape[0])

    max_len = max(elens)
    n_pad = -(-max_len // 8) * 8                            # sublane-align the node dim

    vg_batch = jnp.stack(
        [jnp.pad(g, ((0, n_pad - g.shape[0]), (0, 0))) for g in vgraphs], axis=0)
    adj_batch = jnp.stack(
        [jnp.pad((jnp.asarray(a) != 0).astype(jnp.int8),
                 ((0, n_pad - a.shape[0]), (0, n_pad - a.shape[1]))) for a in adjs],
        axis=0)                                             # int8: 4x less HBM than f32 bias

    B = vg_batch.shape[0]
    G = _choose_graphs_per_step(B, n_pad)
    b_pad = -(-B // G) * G
    if b_pad != B:                                          # pad batch to a multiple of G
        vg_batch = jnp.pad(vg_batch, ((0, b_pad - B), (0, 0), (0, 0)))
        adj_batch = jnp.pad(adj_batch, ((0, b_pad - B), (0, 0), (0, 0)))

    packed = pack_params(params, key_dim=D)
    weight_args = (packed["wqkv"], packed["ln_g"], packed["ln_b"],
                   packed["w1"], packed["b1"], packed["alpha"],
                   packed["w2"], packed["b2"])

    kernel = functools.partial(_graph_gat_kernel, num_layers=L,
                               num_heads=num_heads, graphs_per_step=G,
                               n_pad=n_pad, hdim=D)

    def const_spec(x):
        nd = x.ndim
        return pl.BlockSpec(x.shape, lambda b, _nd=nd: (0,) * _nd)

    grid_spec = pltpu.PrefetchScalarGridSpec(
        num_scalar_prefetch=0,
        grid=(b_pad // G,),
        in_specs=[pl.BlockSpec((G, n_pad, D), lambda b: (b, 0, 0)),
                  pl.BlockSpec((G, n_pad, n_pad), lambda b: (b, 0, 0))]
                 + [const_spec(w) for w in weight_args],
        out_specs=pl.BlockSpec((G, n_pad, D), lambda b: (b, 0, 0)),
    )

    out = pl.pallas_call(
        kernel,
        out_shape=jax.ShapeDtypeStruct((b_pad, n_pad, D), jnp.float32),
        grid_spec=grid_spec,
        compiler_params=pltpu.CompilerParams(
            dimension_semantics=("parallel",),
            vmem_limit_bytes=_vmem_limit_bytes(G, n_pad, D, L)),
    )(vg_batch, adj_batch, *weight_args)

    elens_arr = jnp.array(elens, dtype=jnp.int32)
    emask = jnp.arange(max_len, dtype=jnp.int32)[None, :] < elens_arr[:, None]
    # Match torch zero-padding of short graphs; drop padded rows / padded graphs.
    gents = out[:B, :max_len, :] * emask[:, :, None].astype(jnp.float32)
    return gents, emask


# ----------------------------- parameter init ------------------------------


def init_params(key, hdim, rel_num, n_layers):
    keys = jax.random.split(key, 1 + n_layers)
    # nn.Embedding + xavier_normal_ for renc
    std = (2.0 / (rel_num + hdim)) ** 0.5
    renc = std * jax.random.normal(keys[0], (rel_num, hdim), jnp.float32)

    def lin(k, fan_in, fan_out):
        bound = (1.0 / fan_in) ** 0.5
        # stored already transposed: (in, out), so kernel does x @ W
        return jax.random.uniform(k, (fan_in, fan_out), jnp.float32, -bound, bound)

    layers = []
    for l in range(n_layers):
        lk = jax.random.split(keys[1 + l], 7)
        layers.append(dict(
            wq=lin(lk[0], hdim, hdim),
            wk=lin(lk[1], hdim, hdim),
            wv=lin(lk[2], hdim, hdim),
            w1=lin(lk[3], hdim, 4 * hdim),
            b1=jax.random.uniform(lk[4], (1, 4 * hdim), jnp.float32,
                                  -(1.0 / hdim) ** 0.5, (1.0 / hdim) ** 0.5),
            w2=lin(lk[5], 4 * hdim, hdim),
            b2=jax.random.uniform(lk[6], (1, hdim), jnp.float32,
                                  -(1.0 / (4 * hdim)) ** 0.5, (1.0 / (4 * hdim)) ** 0.5),
            ln_g=jnp.ones((1, hdim), jnp.float32),
            ln_b=jnp.zeros((1, hdim), jnp.float32),
            alpha=jnp.full((1, 4 * hdim), 0.25, jnp.float32),   # PReLU default init
        ))
    return dict(renc=renc, layers=layers)


# ----------------------------------- main -----------------------------------


if __name__ == "__main__":
    hdim = 32          # args.graph_hdim  (4 heads -> head dim 8)
    graph_layers = 2   # args.graph_layers
    rel_num = 48       # args.rel_num (>= 47 so hard-coded root token 46 exists)
    ent_vocab = 20

    key = jax.random.PRNGKey(0)
    kp, ke, ka0, ka1, ka2, ka3 = jax.random.split(key, 6)

    params = init_params(kp, hdim, rel_num, graph_layers)
    ent_embed_table = jax.random.normal(ke, (ent_vocab, hdim), jnp.float32)

    # graph 0: 3 entities + 2 relations + root  -> N = 6
    # graph 1: no entities, 5 relations         -> N = 5
    # graph 2: 4 entities + 3 relations + root  -> N = 8
    # graph 3: no entities, 3 relations         -> N = 3
    ents = [jnp.array([1, 2, 3], dtype=jnp.int32),
            jnp.array([], dtype=jnp.int32),
            jnp.array([4, 7, 9, 11], dtype=jnp.int32),
            jnp.array([], dtype=jnp.int32)]
    rels = [jnp.array([5, 7], dtype=jnp.int32),
            jnp.array([2, 4, 6, 8, 10], dtype=jnp.int32),
            jnp.array([1, 3, 12], dtype=jnp.int32),
            jnp.array([20, 21, 22], dtype=jnp.int32)]

    def make_adj(k, n):
        a = (jax.random.uniform(k, (n, n)) > 0.5).astype(jnp.float32)
        return jnp.maximum(a, jnp.eye(n, dtype=jnp.float32))  # self loops: no all-masked real rows

    adjs = [make_adj(ka0, 6), make_adj(ka1, 5), make_adj(ka2, 8), make_adj(ka3, 3)]

    gents, emask = graph_encoder_forward(params, ents, rels, adjs, ent_embed_table)
    jax.block_until_ready((gents, emask))

    assert gents.shape == (4, 8, hdim) and gents.dtype == jnp.float32
    assert emask.shape == (4, 8) and emask.dtype == jnp.bool_
    assert bool(jnp.all(jnp.isfinite(gents)))
    print("KERNEL_OK")
</pallas_src>

<mosaic_0001>
module attributes {stable_mosaic.version = 11 : i64} {
  func.func @_graph_gat_kernel(%arg0: i32, %arg1: memref<2x8x32xf32, #tpu.memory_space<vmem>>, %arg2: memref<2x8x8xi8, #tpu.memory_space<vmem>>, %arg3: memref<2x32x96xf32, #tpu.memory_space<vmem>>, %arg4: memref<2x1x32xf32, #tpu.memory_space<vmem>>, %arg5: memref<2x1x32xf32, #tpu.memory_space<vmem>>, %arg6: memref<2x32x128xf32, #tpu.memory_space<vmem>>, %arg7: memref<2x1x128xf32, #tpu.memory_space<vmem>>, %arg8: memref<2x1x128xf32, #tpu.memory_space<vmem>>, %arg9: memref<2x128x32xf32, #tpu.memory_space<vmem>>, %arg10: memref<2x1x32xf32, #tpu.memory_space<vmem>>, %arg11: memref<2x8x32xf32, #tpu.memory_space<vmem>>) attributes {dimension_semantics = [#tpu.dimension_semantics<parallel>], iteration_bounds = array<i64: 2>, scalar_prefetch = 0 : i64, scratch_operands = 0 : i64, tpu.core_type = #tpu.core_type<tc>, window_params = [{transform_indices = @transform_0, window_bounds = array<i64: 2, 8, 32>}, {transform_indices = @transform_1, window_bounds = array<i64: 2, 8, 8>}, {pipeline_mode = #tpu.pipeline_mode<synchronous>, transform_indices = @transform_2, window_bounds = array<i64: 2, 32, 96>}, {pipeline_mode = #tpu.pipeline_mode<synchronous>, transform_indices = @transform_3, window_bounds = array<i64: 2, 1, 32>}, {pipeline_mode = #tpu.pipeline_mode<synchronous>, transform_indices = @transform_4, window_bounds = array<i64: 2, 1, 32>}, {pipeline_mode = #tpu.pipeline_mode<synchronous>, transform_indices = @transform_5, window_bounds = array<i64: 2, 32, 128>}, {pipeline_mode = #tpu.pipeline_mode<synchronous>, transform_indices = @transform_6, window_bounds = array<i64: 2, 1, 128>}, {pipeline_mode = #tpu.pipeline_mode<synchronous>, transform_indices = @transform_7, window_bounds = array<i64: 2, 1, 128>}, {pipeline_mode = #tpu.pipeline_mode<synchronous>, transform_indices = @transform_8, window_bounds = array<i64: 2, 128, 32>}, {pipeline_mode = #tpu.pipeline_mode<synchronous>, transform_indices = @transform_9, window_bounds = array<i64: 2, 1, 32>}, {transform_indices = @transform_10, window_bounds = array<i64: 2, 8, 32>}]} {
    %c0 = arith.constant 0 : index
    %c0_0 = arith.constant 0 : index
    %c0_1 = arith.constant 0 : index
    %0 = vector.load %arg1[%c0, %c0_0, %c0_1] : memref<2x8x32xf32, #tpu.memory_space<vmem>>, vector<2x8x32xf32>
    %1 = vector.shape_cast %0 : vector<2x8x32xf32> to vector<16x32xf32>
    %c0_2 = arith.constant 0 : index
    %c0_3 = arith.constant 0 : index
    %c0_4 = arith.constant 0 : index
    %2 = vector.load %arg2[%c0_2, %c0_3, %c0_4] : memref<2x8x8xi8, #tpu.memory_space<vmem>>, vector<2x8x8xi8>
    %3 = arith.sitofp %2 : vector<2x8x8xi8> to vector<2x8x8xf32>
    %cst = arith.constant 0.000000e+00 : f32
    %4 = vector.broadcast %cst : f32 to vector<2x8x8xf32>
    %5 = arith.cmpf oeq, %3, %4 : vector<2x8x8xf32>
    %cst_5 = arith.constant -1.000000e+30 : f32
    %cst_6 = arith.constant 0.000000e+00 : f32
    %6 = vector.broadcast %cst_5 : f32 to vector<2x8x8xf32>
    %7 = vector.broadcast %cst_6 : f32 to vector<2x8x8xf32>
    %8 = arith.select %5, %6, %7 : vector<2x8x8xi1>, vector<2x8x8xf32>
    %c0_7 = arith.constant 0 : index
    %c0_8 = arith.constant 0 : index
    %c0_9 = arith.constant 0 : index
    %9 = vector.load %arg3[%c0_7, %c0_8, %c0_9] : memref<2x32x96xf32, #tpu.memory_space<vmem>>, vector<1x32x96xf32>
    %10 = vector.shape_cast %9 : vector<1x32x96xf32> to vector<32x96xf32>
    %cst_10 = arith.constant dense<0.000000e+00> : vector<16x96xf32>
    %11 = tpu.matmul %1, %10, %cst_10 {dimension_numbers = #tpu.dot_dimension_numbers<[1], [0], [0], [1], [0, 0, 1, 1], [], []>} : vector<16x32xf32>, vector<32x96xf32>, vector<16x96xf32> -> vector<16x96xf32>
    %12 = vector.shape_cast %11 : vector<16x96xf32> to vector<2x8x96xf32>
    %13 = vector.extract_strided_slice %12 {offsets = [0, 0, 0], sizes = [2, 8, 8], strides = [1, 1, 1]} : vector<2x8x96xf32> to vector<2x8x8xf32>
    %14 = vector.extract_strided_slice %12 {offsets = [0, 0, 32], sizes = [2, 8, 8], strides = [1, 1, 1]} : vector<2x8x96xf32> to vector<2x8x8xf32>
    %15 = vector.extract_strided_slice %12 {offsets = [0, 0, 64], sizes = [2, 8, 8], strides = [1, 1, 1]} : vector<2x8x96xf32> to vector<2x8x8xf32>
    "tpu.trace_start"() <{level = 10 : i32, message = "gqc,gkc->gqk"}> : () -> ()
    %cst_11 = arith.constant dense<0.000000e+00> : vector<2x8x8xf32>
    %16 = tpu.matmul %13, %14, %cst_11 {dimension_numbers = #tpu.dot_dimension_numbers<[2], [2], [1], [1], [0, 0, 0, 1, 1, 1], [0], [0]>} : vector<2x8x8xf32>, vector<2x8x8xf32>, vector<2x8x8xf32> -> vector<2x8x8xf32>
    "tpu.trace_stop"() : () -> ()
    %17 = arith.addf %16, %8 : vector<2x8x8xf32>
    %cst_12 = arith.constant dense<0xFF800000> : vector<2x8xf32>
    %18 = vector.multi_reduction <maximumf>, %17, %cst_12 [2] : vector<2x8x8xf32> to vector<2x8xf32>
    %19 = vector.shape_cast %18 : vector<2x8xf32> to vector<2x8x1xf32>
    %20 = vector.broadcast %19 : vector<2x8x1xf32> to vector<2x8x8xf32>
    %21 = arith.subf %17, %20 : vector<2x8x8xf32>
    %22 = math.exp %21 : vector<2x8x8xf32>
    %cst_13 = arith.constant dense<0.000000e+00> : vector<2x8xf32>
    %23 = vector.multi_reduction <add>, %22, %cst_13 [2] : vector<2x8x8xf32> to vector<2x8xf32>
    %24 = vector.shape_cast %23 : vector<2x8xf32> to vector<2x8x1xf32>
    %25 = tpu.reciprocal %24 {approx = true} : vector<2x8x1xf32> -> vector<2x8x1xf32>
    %26 = vector.broadcast %25 : vector<2x8x1xf32> to vector<2x8x8xf32>
    %27 = arith.mulf %22, %26 : vector<2x8x8xf32>
    "tpu.trace_start"() <{level = 10 : i32, message = "gqk,gkc->gqc"}> : () -> ()
    %cst_14 = arith.constant dense<0.000000e+00> : vector<2x8x8xf32>
    %28 = tpu.matmul %27, %15, %cst_14 {dimension_numbers = #tpu.dot_dimension_numbers<[2], [1], [1], [2], [0, 0, 0, 1, 1, 2], [0], [0]>} : vector<2x8x8xf32>, vector<2x8x8xf32>, vector<2x8x8xf32> -> vector<2x8x8xf32>
    "tpu.trace_stop"() : () -> ()
    %29 = vector.extract_strided_slice %12 {offsets = [0, 0, 8], sizes = [2, 8, 8], strides = [1, 1, 1]} : vector<2x8x96xf32> to vector<2x8x8xf32>
    %30 = vector.extract_strided_slice %12 {offsets = [0, 0, 40], sizes = [2, 8, 8], strides = [1, 1, 1]} : vector<2x8x96xf32> to vector<2x8x8xf32>
    %31 = vector.extract_strided_slice %12 {offsets = [0, 0, 72], sizes = [2, 8, 8], strides = [1, 1, 1]} : vector<2x8x96xf32> to vector<2x8x8xf32>
    "tpu.trace_start"() <{level = 10 : i32, message = "gqc,gkc->gqk"}> : () -> ()
    %cst_15 = arith.constant dense<0.000000e+00> : vector<2x8x8xf32>
    %32 = tpu.matmul %29, %30, %cst_15 {dimension_numbers = #tpu.dot_dimension_numbers<[2], [2], [1], [1], [0, 0, 0, 1, 1, 1], [0], [0]>} : vector<2x8x8xf32>, vector<2x8x8xf32>, vector<2x8x8xf32> -> vector<2x8x8xf32>
    "tpu.trace_stop"() : () -> ()
    %33 = arith.addf %32, %8 : vector<2x8x8xf32>
    %cst_16 = arith.constant dense<0xFF800000> : vector<2x8xf32>
    %34 = vector.multi_reduction <maximumf>, %33, %cst_16 [2] : vector<2x8x8xf32> to vector<2x8xf32>
    %35 = vector.shape_cast %34 : vector<2x8xf32> to vector<2x8x1xf32>
    %36 = vector.broadcast %35 : vector<2x8x1xf32> to vector<2x8x8xf32>
    %37 = arith.subf %33, %36 : vector<2x8x8xf32>
    %38 = math.exp %37 : vector<2x8x8xf32>
    %cst_17 = arith.constant dense<0.000000e+00> : vector<2x8xf32>
    %39 = vector.multi_reduction <add>, %38, %cst_17 [2] : vector<2x8x8xf32> to vector<2x8xf32>
    %40 = vector.shape_cast %39 : vector<2x8xf32> to vector<2x8x1xf32>
    %41 = tpu.reciprocal %40 {approx = true} : vector<2x8x1xf32> -> vector<2x8x1xf32>
    %42 = vector.broadcast %41 : vector<2x8x1xf32> to vector<2x8x8xf32>
    %43 = arith.mulf %38, %42 : vector<2x8x8xf32>
    "tpu.trace_start"() <{level = 10 : i32, message = "gqk,gkc->gqc"}> : () -> ()
    %cst_18 = arith.constant dense<0.000000e+00> : vector<2x8x8xf32>
    %44 = tpu.matmul %43, %31, %cst_18 {dimension_numbers = #tpu.dot_dimension_numbers<[2], [1], [1], [2], [0, 0, 0, 1, 1, 2], [0], [0]>} : vector<2x8x8xf32>, vector<2x8x8xf32>, vector<2x8x8xf32> -> vector<2x8x8xf32>
    "tpu.trace_stop"() : () -> ()
    %45 = vector.extract_strided_slice %12 {offsets = [0, 0, 16], sizes = [2, 8, 8], strides = [1, 1, 1]} : vector<2x8x96xf32> to vector<2x8x8xf32>
    %46 = vector.extract_strided_slice %12 {offsets = [0, 0, 48], sizes = [2, 8, 8], strides = [1, 1, 1]} : vector<2x8x96xf32> to vector<2x8x8xf32>
    %47 = vector.extract_strided_slice %12 {offsets = [0, 0, 80], sizes = [2, 8, 8], strides = [1, 1, 1]} : vector<2x8x96xf32> to vector<2x8x8xf32>
    "tpu.trace_start"() <{level = 10 : i32, message = "gqc,gkc->gqk"}> : () -> ()
    %cst_19 = arith.constant dense<0.000000e+00> : vector<2x8x8xf32>
    %48 = tpu.matmul %45, %46, %cst_19 {dimension_numbers = #tpu.dot_dimension_numbers<[2], [2], [1], [1], [0, 0, 0, 1, 1, 1], [0], [0]>} : vector<2x8x8xf32>, vector<2x8x8xf32>, vector<2x8x8xf32> -> vector<2x8x8xf32>
    "tpu.trace_stop"() : () -> ()
    %49 = arith.addf %48, %8 : vector<2x8x8xf32>
    %cst_20 = arith.constant dense<0xFF800000> : vector<2x8xf32>
    %50 = vector.multi_reduction <maximumf>, %49, %cst_20 [2] : vector<2x8x8xf32> to vector<2x8xf32>
    %51 = vector.shape_cast %50 : vector<2x8xf32> to vector<2x8x1xf32>
    %52 = vector.broadcast %51 : vector<2x8x1xf32> to vector<2x8x8xf32>
    %53 = arith.subf %49, %52 : vector<2x8x8xf32>
    %54 = math.exp %53 : vector<2x8x8xf32>
    %cst_21 = arith.constant dense<0.000000e+00> : vector<2x8xf32>
    %55 = vector.multi_reduction <add>, %54, %cst_21 [2] : vector<2x8x8xf32> to vector<2x8xf32>
    %56 = vector.shape_cast %55 : vector<2x8xf32> to vector<2x8x1xf32>
    %57 = tpu.reciprocal %56 {approx = true} : vector<2x8x1xf32> -> vector<2x8x1xf32>
    %58 = vector.broadcast %57 : vector<2x8x1xf32> to vector<2x8x8xf32>
    %59 = arith.mulf %54, %58 : vector<2x8x8xf32>
    "tpu.trace_start"() <{level = 10 : i32, message = "gqk,gkc->gqc"}> : () -> ()
    %cst_22 = arith.constant dense<0.000000e+00> : vector<2x8x8xf32>
    %60 = tpu.matmul %59, %47, %cst_22 {dimension_numbers = #tpu.dot_dimension_numbers<[2], [1], [1], [2], [0, 0, 0, 1, 1, 2], [0], [0]>} : vector<2x8x8xf32>, vector<2x8x8xf32>, vector<2x8x8xf32> -> vector<2x8x8xf32>
    "tpu.trace_stop"() : () -> ()
    %61 = vector.extract_strided_slice %12 {offsets = [0, 0, 24], sizes = [2, 8, 8], strides = [1, 1, 1]} : vector<2x8x96xf32> to vector<2x8x8xf32>
    %62 = vector.extract_strided_slice %12 {offsets = [0, 0, 56], sizes = [2, 8, 8], strides = [1, 1, 1]} : vector<2x8x96xf32> to vector<2x8x8xf32>
    %63 = vector.extract_strided_slice %12 {offsets = [0, 0, 88], sizes = [2, 8, 8], strides = [1, 1, 1]} : vector<2x8x96xf32> to vector<2x8x8xf32>
    "tpu.trace_start"() <{level = 10 : i32, message = "gqc,gkc->gqk"}> : () -> ()
    %cst_23 = arith.constant dense<0.000000e+00> : vector<2x8x8xf32>
    %64 = tpu.matmul %61, %62, %cst_23 {dimension_numbers = #tpu.dot_dimension_numbers<[2], [2], [1], [1], [0, 0, 0, 1, 1, 1], [0], [0]>} : vector<2x8x8xf32>, vector<2x8x8xf32>, vector<2x8x8xf32> -> vector<2x8x8xf32>
    "tpu.trace_stop"() : () -> ()
    %65 = arith.addf %64, %8 : vector<2x8x8xf32>
    %cst_24 = arith.constant dense<0xFF800000> : vector<2x8xf32>
    %66 = vector.multi_reduction <maximumf>, %65, %cst_24 [2] : vector<2x8x8xf32> to vector<2x8xf32>
    %67 = vector.shape_cast %66 : vector<2x8xf32> to vector<2x8x1xf32>
    %68 = vector.broadcast %67 : vector<2x8x1xf32> to vector<2x8x8xf32>
    %69 = arith.subf %65, %68 : vector<2x8x8xf32>
    %70 = math.exp %69 : vector<2x8x8xf32>
    %cst_25 = arith.constant dense<0.000000e+00> : vector<2x8xf32>
    %71 = vector.multi_reduction <add>, %70, %cst_25 [2] : vector<2x8x8xf32> to vector<2x8xf32>
    %72 = vector.shape_cast %71 : vector<2x8xf32> to vector<2x8x1xf32>
    %73 = tpu.reciprocal %72 {approx = true} : vector<2x8x1xf32> -> vector<2x8x1xf32>
    %74 = vector.broadcast %73 : vector<2x8x1xf32> to vector<2x8x8xf32>
    %75 = arith.mulf %70, %74 : vector<2x8x8xf32>
    "tpu.trace_start"() <{level = 10 : i32, message = "gqk,gkc->gqc"}> : () -> ()
    %cst_26 = arith.constant dense<0.000000e+00> : vector<2x8x8xf32>
    %76 = tpu.matmul %75, %63, %cst_26 {dimension_numbers = #tpu.dot_dimension_numbers<[2], [1], [1], [2], [0, 0, 0, 1, 1, 2], [0], [0]>} : vector<2x8x8xf32>, vector<2x8x8xf32>, vector<2x8x8xf32> -> vector<2x8x8xf32>
    "tpu.trace_stop"() : () -> ()
    %77 = tpu.concatenate %28, %44, %60, %76 in 2 : vector<2x8x8xf32>, vector<2x8x8xf32>, vector<2x8x8xf32>, vector<2x8x8xf32> -> vector<2x8x32xf32>
    %78 = vector.shape_cast %77 : vector<2x8x32xf32> to vector<16x32xf32>
    %79 = arith.addf %78, %1 : vector<16x32xf32>
    %c0_27 = arith.constant 0 : index
    %c0_28 = arith.constant 0 : index
    %c0_29 = arith.constant 0 : index
    %80 = vector.load %arg4[%c0_27, %c0_28, %c0_29] : memref<2x1x32xf32, #tpu.memory_space<vmem>>, vector<1x1x32xf32>
    %81 = vector.shape_cast %80 : vector<1x1x32xf32> to vector<1x32xf32>
    %c0_30 = arith.constant 0 : index
    %c0_31 = arith.constant 0 : index
    %c0_32 = arith.constant 0 : index
    %82 = vector.load %arg5[%c0_30, %c0_31, %c0_32] : memref<2x1x32xf32, #tpu.memory_space<vmem>>, vector<1x1x32xf32>
    %83 = vector.shape_cast %82 : vector<1x1x32xf32> to vector<1x32xf32>
    %cst_33 = arith.constant dense<0.000000e+00> : vector<16xf32>
    %84 = vector.multi_reduction <add>, %79, %cst_33 [1] : vector<16x32xf32> to vector<16xf32>
    %85 = vector.shape_cast %84 : vector<16xf32> to vector<16x1xf32>
    %cst_34 = arith.constant 3.200000e+01 : f32
    %86 = vector.broadcast %cst_34 : f32 to vector<16x1xf32>
    %87 = arith.divf %85, %86 : vector<16x1xf32>
    %88 = vector.broadcast %87 : vector<16x1xf32> to vector<16x32xf32>
    %89 = arith.subf %79, %88 : vector<16x32xf32>
    %90 = arith.mulf %89, %89 : vector<16x32xf32>
    %cst_35 = arith.constant dense<0.000000e+00> : vector<16xf32>
    %91 = vector.multi_reduction <add>, %90, %cst_35 [1] : vector<16x32xf32> to vector<16xf32>
    %92 = vector.shape_cast %91 : vector<16xf32> to vector<16x1xf32>
    %cst_36 = arith.constant 3.200000e+01 : f32
    %93 = vector.broadcast %cst_36 : f32 to vector<16x1xf32>
    %94 = arith.divf %92, %93 : vector<16x1xf32>
    %cst_37 = arith.constant 9.99999974E-6 : f32
    %95 = vector.broadcast %cst_37 : f32 to vector<16x1xf32>
    %96 = arith.addf %94, %95 : vector<16x1xf32>
    %97 = math.rsqrt %96 : vector<16x1xf32>
    %98 = vector.broadcast %97 : vector<16x1xf32> to vector<16x32xf32>
    %99 = arith.mulf %89, %98 : vector<16x32xf32>
    %100 = vector.broadcast %81 : vector<1x32xf32> to vector<16x32xf32>
    %101 = arith.mulf %99, %100 : vector<16x32xf32>
    %102 = vector.broadcast %83 : vector<1x32xf32> to vector<16x32xf32>
    %103 = arith.addf %101, %102 : vector<16x32xf32>
    %c0_38 = arith.constant 0 : index
    %c0_39 = arith.constant 0 : index
    %c0_40 = arith.constant 0 : index
    %104 = vector.load %arg6[%c0_38, %c0_39, %c0_40] : memref<2x32x128xf32, #tpu.memory_space<vmem>>, vector<1x32x128xf32>
    %105 = vector.shape_cast %104 : vector<1x32x128xf32> to vector<32x128xf32>
    %cst_41 = arith.constant dense<0.000000e+00> : vector<16x128xf32>
    %106 = tpu.matmul %103, %105, %cst_41 {dimension_numbers = #tpu.dot_dimension_numbers<[1], [0], [0], [1], [0, 0, 1, 1], [], []>} : vector<16x32xf32>, vector<32x128xf32>, vector<16x128xf32> -> vector<16x128xf32>
    %c0_42 = arith.constant 0 : index
    %c0_43 = arith.constant 0 : index
    %c0_44 = arith.constant 0 : index
    %107 = vector.load %arg7[%c0_42, %c0_43, %c0_44] : memref<2x1x128xf32, #tpu.memory_space<vmem>>, vector<1x1x128xf32>
    %108 = vector.shape_cast %107 : vector<1x1x128xf32> to vector<1x128xf32>
    %109 = vector.broadcast %108 : vector<1x128xf32> to vector<16x128xf32>
    %110 = arith.addf %106, %109 : vector<16x128xf32>
    %c0_45 = arith.constant 0 : index
    %c0_46 = arith.constant 0 : index
    %c0_47 = arith.constant 0 : index
    %111 = vector.load %arg8[%c0_45, %c0_46, %c0_47] : memref<2x1x128xf32, #tpu.memory_space<vmem>>, vector<1x1x128xf32>
    %112 = vector.shape_cast %111 : vector<1x1x128xf32> to vector<1x128xf32>
    %cst_48 = arith.constant 0.000000e+00 : f32
    %113 = vector.broadcast %cst_48 : f32 to vector<16x128xf32>
    %114 = arith.cmpf oge, %110, %113 : vector<16x128xf32>
    %115 = vector.broadcast %112 : vector<1x128xf32> to vector<16x128xf32>
    %116 = arith.mulf %115, %110 : vector<16x128xf32>
    %117 = arith.select %114, %110, %116 : vector<16x128xi1>, vector<16x128xf32>
    %c0_49 = arith.constant 0 : index
    %c0_50 = arith.constant 0 : index
    %c0_51 = arith.constant 0 : index
    %118 = vector.load %arg9[%c0_49, %c0_50, %c0_51] : memref<2x128x32xf32, #tpu.memory_space<vmem>>, vector<1x128x32xf32>
    %119 = vector.shape_cast %118 : vector<1x128x32xf32> to vector<128x32xf32>
    %cst_52 = arith.constant dense<0.000000e+00> : vector<16x32xf32>
    %120 = tpu.matmul %117, %119, %cst_52 {dimension_numbers = #tpu.dot_dimension_numbers<[1], [0], [0], [1], [0, 0, 1, 1], [], []>} : vector<16x128xf32>, vector<128x32xf32>, vector<16x32xf32> -> vector<16x32xf32>
    %c0_53 = arith.constant 0 : index
    %c0_54 = arith.constant 0 : index
    %c0_55 = arith.constant 0 : index
    %121 = vector.load %arg10[%c0_53, %c0_54, %c0_55] : memref<2x1x32xf32, #tpu.memory_space<vmem>>, vector<1x1x32xf32>
    %122 = vector.shape_cast %121 : vector<1x1x32xf32> to vector<1x32xf32>
    %123 = vector.broadcast %122 : vector<1x32xf32> to vector<16x32xf32>
    %124 = arith.addf %120, %123 : vector<16x32xf32>
    %125 = arith.addf %124, %103 : vector<16x32xf32>
    %cst_56 = arith.constant dense<0.000000e+00> : vector<16xf32>
    %126 = vector.multi_reduction <add>, %125, %cst_56 [1] : vector<16x32xf32> to vector<16xf32>
    %127 = vector.shape_cast %126 : vector<16xf32> to vector<16x1xf32>
    %cst_57 = arith.constant 3.200000e+01 : f32
    %128 = vector.broadcast %cst_57 : f32 to vector<16x1xf32>
    %129 = arith.divf %127, %128 : vector<16x1xf32>
    %130 = vector.broadcast %129 : vector<16x1xf32> to vector<16x32xf32>
    %131 = arith.subf %125, %130 : vector<16x32xf32>
    %132 = arith.mulf %131, %131 : vector<16x32xf32>
    %cst_58 = arith.constant dense<0.000000e+00> : vector<16xf32>
    %133 = vector.multi_reduction <add>, %132, %cst_58 [1] : vector<16x32xf32> to vector<16xf32>
    %134 = vector.shape_cast %133 : vector<16xf32> to vector<16x1xf32>
    %cst_59 = arith.constant 3.200000e+01 : f32
    %135 = vector.broadcast %cst_59 : f32 to vector<16x1xf32>
    %136 = arith.divf %134, %135 : vector<16x1xf32>
    %cst_60 = arith.constant 9.99999974E-6 : f32
    %137 = vector.broadcast %cst_60 : f32 to vector<16x1xf32>
    %138 = arith.addf %136, %137 : vector<16x1xf32>
    %139 = math.rsqrt %138 : vector<16x1xf32>
    %140 = vector.broadcast %139 : vector<16x1xf32> to vector<16x32xf32>
    %141 = arith.mulf %131, %140 : vector<16x32xf32>
    %142 = vector.broadcast %81 : vector<1x32xf32> to vector<16x32xf32>
    %143 = arith.mulf %141, %142 : vector<16x32xf32>
    %144 = vector.broadcast %83 : vector<1x32xf32> to vector<16x32xf32>
    %145 = arith.addf %143, %144 : vector<16x32xf32>
    %c1 = arith.constant 1 : index
    %c0_61 = arith.constant 0 : index
    %c0_62 = arith.constant 0 : index
    %146 = vector.load %arg3[%c1, %c0_61, %c0_62] : memref<2x32x96xf32, #tpu.memory_space<vmem>>, vector<1x32x96xf32>
    %147 = vector.shape_cast %146 : vector<1x32x96xf32> to vector<32x96xf32>
    %cst_63 = arith.constant dense<0.000000e+00> : vector<16x96xf32>
    %148 = tpu.matmul %145, %147, %cst_63 {dimension_numbers = #tpu.dot_dimension_numbers<[1], [0], [0], [1], [0, 0, 1, 1], [], []>} : vector<16x32xf32>, vector<32x96xf32>, vector<16x96xf32> -> vector<16x96xf32>
    %149 = vector.shape_cast %148 : vector<16x96xf32> to vector<2x8x96xf32>
    %150 = vector.extract_strided_slice %149 {offsets = [0, 0, 0], sizes = [2, 8, 8], strides = [1, 1, 1]} : vector<2x8x96xf32> to vector<2x8x8xf32>
    %151 = vector.extract_strided_slice %149 {offsets = [0, 0, 32], sizes = [2, 8, 8], strides = [1, 1, 1]} : vector<2x8x96xf32> to vector<2x8x8xf32>
    %152 = vector.extract_strided_slice %149 {offsets = [0, 0, 64], sizes = [2, 8, 8], strides = [1, 1, 1]} : vector<2x8x96xf32> to vector<2x8x8xf32>
    "tpu.trace_start"() <{level = 10 : i32, message = "gqc,gkc->gqk"}> : () -> ()
    %cst_64 = arith.constant dense<0.000000e+00> : vector<2x8x8xf32>
    %153 = tpu.matmul %150, %151, %cst_64 {dimension_numbers = #tpu.dot_dimension_numbers<[2], [2], [1], [1], [0, 0, 0, 1, 1, 1], [0], [0]>} : vector<2x8x8xf32>, vector<2x8x8xf32>, vector<2x8x8xf32> -> vector<2x8x8xf32>
    "tpu.trace_stop"() : () -> ()
    %154 = arith.addf %153, %8 : vector<2x8x8xf32>
    %cst_65 = arith.constant dense<0xFF800000> : vector<2x8xf32>
    %155 = vector.multi_reduction <maximumf>, %154, %cst_65 [2] : vector<2x8x8xf32> to vector<2x8xf32>
    %156 = vector.shape_cast %155 : vector<2x8xf32> to vector<2x8x1xf32>
    %157 = vector.broadcast %156 : vector<2x8x1xf32> to vector<2x8x8xf32>
    %158 = arith.subf %154, %157 : vector<2x8x8xf32>
    %159 = math.exp %158 : vector<2x8x8xf32>
    %cst_66 = arith.constant dense<0.000000e+00> : vector<2x8xf32>
    %160 = vector.multi_reduction <add>, %159, %cst_66 [2] : vector<2x8x8xf32> to vector<2x8xf32>
    %161 = vector.shape_cast %160 : vector<2x8xf32> to vector<2x8x1xf32>
    %162 = tpu.reciprocal %161 {approx = true} : vector<2x8x1xf32> -> vector<2x8x1xf32>
    %163 = vector.broadcast %162 : vector<2x8x1xf32> to vector<2x8x8xf32>
    %164 = arith.mulf %159, %163 : vector<2x8x8xf32>
    "tpu.trace_start"() <{level = 10 : i32, message = "gqk,gkc->gqc"}> : () -> ()
    %cst_67 = arith.constant dense<0.000000e+00> : vector<2x8x8xf32>
    %165 = tpu.matmul %164, %152, %cst_67 {dimension_numbers = #tpu.dot_dimension_numbers<[2], [1], [1], [2], [0, 0, 0, 1, 1, 2], [0], [0]>} : vector<2x8x8xf32>, vector<2x8x8xf32>, vector<2x8x8xf32> -> vector<2x8x8xf32>
    "tpu.trace_stop"() : () -> ()
    %166 = vector.extract_strided_slice %149 {offsets = [0, 0, 8], sizes = [2, 8, 8], strides = [1, 1, 1]} : vector<2x8x96xf32> to vector<2x8x8xf32>
    %167 = vector.extract_strided_slice %149 {offsets = [0, 0, 40], sizes = [2, 8, 8], strides = [1, 1, 1]} : vector<2x8x96xf32> to vector<2x8x8xf32>
    %168 = vector.extract_strided_slice %149 {offsets = [0, 0, 72], sizes = [2, 8, 8], strides = [1, 1, 1]} : vector<2x8x96xf32> to vector<2x8x8xf32>
    "tpu.trace_start"() <{level = 10 : i32, message = "gqc,gkc->gqk"}> : () -> ()
    %cst_68 = arith.constant dense<0.000000e+00> : vector<2x8x8xf32>
    %169 = tpu.matmul %166, %167, %cst_68 {dimension_numbers = #tpu.dot_dimension_numbers<[2], [2], [1], [1], [0, 0, 0, 1, 1, 1], [0], [0]>} : vector<2x8x8xf32>, vector<2x8x8xf32>, vector<2x8x8xf32> -> vector<2x8x8xf32>
    "tpu.trace_stop"() : () -> ()
    %170 = arith.addf %169, %8 : vector<2x8x8xf32>
    %cst_69 = arith.constant dense<0xFF800000> : vector<2x8xf32>
    %171 = vector.multi_reduction <maximumf>, %170, %cst_69 [2] : vector<2x8x8xf32> to vector<2x8xf32>
    %172 = vector.shape_cast %171 : vector<2x8xf32> to vector<2x8x1xf32>
    %173 = vector.broadcast %172 : vector<2x8x1xf32> to vector<2x8x8xf32>
    %174 = arith.subf %170, %173 : vector<2x8x8xf32>
    %175 = math.exp %174 : vector<2x8x8xf32>
    %cst_70 = arith.constant dense<0.000000e+00> : vector<2x8xf32>
    %176 = vector.multi_reduction <add>, %175, %cst_70 [2] : vector<2x8x8xf32> to vector<2x8xf32>
    %177 = vector.shape_cast %176 : vector<2x8xf32> to vector<2x8x1xf32>
    %178 = tpu.reciprocal %177 {approx = true} : vector<2x8x1xf32> -> vector<2x8x1xf32>
    %179 = vector.broadcast %178 : vector<2x8x1xf32> to vector<2x8x8xf32>
    %180 = arith.mulf %175, %179 : vector<2x8x8xf32>
    "tpu.trace_start"() <{level = 10 : i32, message = "gqk,gkc->gqc"}> : () -> ()
    %cst_71 = arith.constant dense<0.000000e+00> : vector<2x8x8xf32>
    %181 = tpu.matmul %180, %168, %cst_71 {dimension_numbers = #tpu.dot_dimension_numbers<[2], [1], [1], [2], [0, 0, 0, 1, 1, 2], [0], [0]>} : vector<2x8x8xf32>, vector<2x8x8xf32>, vector<2x8x8xf32> -> vector<2x8x8xf32>
    "tpu.trace_stop"() : () -> ()
    %182 = vector.extract_strided_slice %149 {offsets = [0, 0, 16], sizes = [2, 8, 8], strides = [1, 1, 1]} : vector<2x8x96xf32> to vector<2x8x8xf32>
    %183 = vector.extract_strided_slice %149 {offsets = [0, 0, 48], sizes = [2, 8, 8], strides = [1, 1, 1]} : vector<2x8x96xf32> to vector<2x8x8xf32>
    %184 = vector.extract_strided_slice %149 {offsets = [0, 0, 80], sizes = [2, 8, 8], strides = [1, 1, 1]} : vector<2x8x96xf32> to vector<2x8x8xf32>
    "tpu.trace_start"() <{level = 10 : i32, message = "gqc,gkc->gqk"}> : () -> ()
    %cst_72 = arith.constant dense<0.000000e+00> : vector<2x8x8xf32>
    %185 = tpu.matmul %182, %183, %cst_72 {dimension_numbers = #tpu.dot_dimension_numbers<[2], [2], [1], [1], [0, 0, 0, 1, 1, 1], [0], [0]>} : vector<2x8x8xf32>, vector<2x8x8xf32>, vector<2x8x8xf32> -> vector<2x8x8xf32>
    "tpu.trace_stop"() : () -> ()
    %186 = arith.addf %185, %8 : vector<2x8x8xf32>
    %cst_73 = arith.constant dense<0xFF800000> : vector<2x8xf32>
    %187 = vector.multi_reduction <maximumf>, %186, %cst_73 [2] : vector<2x8x8xf32> to vector<2x8xf32>
    %188 = vector.shape_cast %187 : vector<2x8xf32> to vector<2x8x1xf32>
    %189 = vector.broadcast %188 : vector<2x8x1xf32> to vector<2x8x8xf32>
    %190 = arith.subf %186, %189 : vector<2x8x8xf32>
    %191 = math.exp %190 : vector<2x8x8xf32>
    %cst_74 = arith.constant dense<0.000000e+00> : vector<2x8xf32>
    %192 = vector.multi_reduction <add>, %191, %cst_74 [2] : vector<2x8x8xf32> to vector<2x8xf32>
    %193 = vector.shape_cast %192 : vector<2x8xf32> to vector<2x8x1xf32>
    %194 = tpu.reciprocal %193 {approx = true} : vector<2x8x1xf32> -> vector<2x8x1xf32>
    %195 = vector.broadcast %194 : vector<2x8x1xf32> to vector<2x8x8xf32>
    %196 = arith.mulf %191, %195 : vector<2x8x8xf32>
    "tpu.trace_start"() <{level = 10 : i32, message = "gqk,gkc->gqc"}> : () -> ()
    %cst_75 = arith.constant dense<0.000000e+00> : vector<2x8x8xf32>
    %197 = tpu.matmul %196, %184, %cst_75 {dimension_numbers = #tpu.dot_dimension_numbers<[2], [1], [1], [2], [0, 0, 0, 1, 1, 2], [0], [0]>} : vector<2x8x8xf32>, vector<2x8x8xf32>, vector<2x8x8xf32> -> vector<2x8x8xf32>
    "tpu.trace_stop"() : () -> ()
    %198 = vector.extract_strided_slice %149 {offsets = [0, 0, 24], sizes = [2, 8, 8], strides = [1, 1, 1]} : vector<2x8x96xf32> to vector<2x8x8xf32>
    %199 = vector.extract_strided_slice %149 {offsets = [0, 0, 56], sizes = [2, 8, 8], strides = [1, 1, 1]} : vector<2x8x96xf32> to vector<2x8x8xf32>
    %200 = vector.extract_strided_slice %149 {offsets = [0, 0, 88], sizes = [2, 8, 8], strides = [1, 1, 1]} : vector<2x8x96xf32> to vector<2x8x8xf32>
    "tpu.trace_start"() <{level = 10 : i32, message = "gqc,gkc->gqk"}> : () -> ()
    %cst_76 = arith.constant dense<0.000000e+00> : vector<2x8x8xf32>
    %201 = tpu.matmul %198, %199, %cst_76 {dimension_numbers = #tpu.dot_dimension_numbers<[2], [2], [1], [1], [0, 0, 0, 1, 1, 1], [0], [0]>} : vector<2x8x8xf32>, vector<2x8x8xf32>, vector<2x8x8xf32> -> vector<2x8x8xf32>
    "tpu.trace_stop"() : () -> ()
    %202 = arith.addf %201, %8 : vector<2x8x8xf32>
    %cst_77 = arith.constant dense<0xFF800000> : vector<2x8xf32>
    %203 = vector.multi_reduction <maximumf>, %202, %cst_77 [2] : vector<2x8x8xf32> to vector<2x8xf32>
    %204 = vector.shape_cast %203 : vector<2x8xf32> to vector<2x8x1xf32>
    %205 = vector.broadcast %204 : vector<2x8x1xf32> to vector<2x8x8xf32>
    %206 = arith.subf %202, %205 : vector<2x8x8xf32>
    %207 = math.exp %206 : vector<2x8x8xf32>
    %cst_78 = arith.constant dense<0.000000e+00> : vector<2x8xf32>
    %208 = vector.multi_reduction <add>, %207, %cst_78 [2] : vector<2x8x8xf32> to vector<2x8xf32>
    %209 = vector.shape_cast %208 : vector<2x8xf32> to vector<2x8x1xf32>
    %210 = tpu.reciprocal %209 {approx = true} : vector<2x8x1xf32> -> vector<2x8x1xf32>
    %211 = vector.broadcast %210 : vector<2x8x1xf32> to vector<2x8x8xf32>
    %212 = arith.mulf %207, %211 : vector<2x8x8xf32>
    "tpu.trace_start"() <{level = 10 : i32, message = "gqk,gkc->gqc"}> : () -> ()
    %cst_79 = arith.constant dense<0.000000e+00> : vector<2x8x8xf32>
    %213 = tpu.matmul %212, %200, %cst_79 {dimension_numbers = #tpu.dot_dimension_numbers<[2], [1], [1], [2], [0, 0, 0, 1, 1, 2], [0], [0]>} : vector<2x8x8xf32>, vector<2x8x8xf32>, vector<2x8x8xf32> -> vector<2x8x8xf32>
    "tpu.trace_stop"() : () -> ()
    %214 = tpu.concatenate %165, %181, %197, %213 in 2 : vector<2x8x8xf32>, vector<2x8x8xf32>, vector<2x8x8xf32>, vector<2x8x8xf32> -> vector<2x8x32xf32>
    %215 = vector.shape_cast %214 : vector<2x8x32xf32> to vector<16x32xf32>
    %216 = arith.addf %215, %145 : vector<16x32xf32>
    %c1_80 = arith.constant 1 : index
    %c0_81 = arith.constant 0 : index
    %c0_82 = arith.constant 0 : index
    %217 = vector.load %arg4[%c1_80, %c0_81, %c0_82] : memref<2x1x32xf32, #tpu.memory_space<vmem>>, vector<1x1x32xf32>
    %218 = vector.shape_cast %217 : vector<1x1x32xf32> to vector<1x32xf32>
    %c1_83 = arith.constant 1 : index
    %c0_84 = arith.constant 0 : index
    %c0_85 = arith.constant 0 : index
    %219 = vector.load %arg5[%c1_83, %c0_84, %c0_85] : memref<2x1x32xf32, #tpu.memory_space<vmem>>, vector<1x1x32xf32>
    %220 = vector.shape_cast %219 : vector<1x1x32xf32> to vector<1x32xf32>
    %cst_86 = arith.constant dense<0.000000e+00> : vector<16xf32>
    %221 = vector.multi_reduction <add>, %216, %cst_86 [1] : vector<16x32xf32> to vector<16xf32>
    %222 = vector.shape_cast %221 : vector<16xf32> to vector<16x1xf32>
    %cst_87 = arith.constant 3.200000e+01 : f32
    %223 = vector.broadcast %cst_87 : f32 to vector<16x1xf32>
    %224 = arith.divf %222, %223 : vector<16x1xf32>
    %225 = vector.broadcast %224 : vector<16x1xf32> to vector<16x32xf32>
    %226 = arith.subf %216, %225 : vector<16x32xf32>
    %227 = arith.mulf %226, %226 : vector<16x32xf32>
    %cst_88 = arith.constant dense<0.000000e+00> : vector<16xf32>
    %228 = vector.multi_reduction <add>, %227, %cst_88 [1] : vector<16x32xf32> to vector<16xf32>
    %229 = vector.shape_cast %228 : vector<16xf32> to vector<16x1xf32>
    %cst_89 = arith.constant 3.200000e+01 : f32
    %230 = vector.broadcast %cst_89 : f32 to vector<16x1xf32>
    %231 = arith.divf %229, %230 : vector<16x1xf32>
    %cst_90 = arith.constant 9.99999974E-6 : f32
    %232 = vector.broadcast %cst_90 : f32 to vector<16x1xf32>
    %233 = arith.addf %231, %232 : vector<16x1xf32>
    %234 = math.rsqrt %233 : vector<16x1xf32>
    %235 = vector.broadcast %234 : vector<16x1xf32> to vector<16x32xf32>
    %236 = arith.mulf %226, %235 : vector<16x32xf32>
    %237 = vector.broadcast %218 : vector<1x32xf32> to vector<16x32xf32>
    %238 = arith.mulf %236, %237 : vector<16x32xf32>
    %239 = vector.broadcast %220 : vector<1x32xf32> to vector<16x32xf32>
    %240 = arith.addf %238, %239 : vector<16x32xf32>
    %c1_91 = arith.constant 1 : index
    %c0_92 = arith.constant 0 : index
    %c0_93 = arith.constant 0 : index
    %241 = vector.load %arg6[%c1_91, %c0_92, %c0_93] : memref<2x32x128xf32, #tpu.memory_space<vmem>>, vector<1x32x128xf32>
    %242 = vector.shape_cast %241 : vector<1x32x128xf32> to vector<32x128xf32>
    %cst_94 = arith.constant dense<0.000000e+00> : vector<16x128xf32>
    %243 = tpu.matmul %240, %242, %cst_94 {dimension_numbers = #tpu.dot_dimension_numbers<[1], [0], [0], [1], [0, 0, 1, 1], [], []>} : vector<16x32xf32>, vector<32x128xf32>, vector<16x128xf32> -> vector<16x128xf32>
    %c1_95 = arith.constant 1 : index
    %c0_96 = arith.constant 0 : index
    %c0_97 = arith.constant 0 : index
    %244 = vector.load %arg7[%c1_95, %c0_96, %c0_97] : memref<2x1x128xf32, #tpu.memory_space<vmem>>, vector<1x1x128xf32>
    %245 = vector.shape_cast %244 : vector<1x1x128xf32> to vector<1x128xf32>
    %246 = vector.broadcast %245 : vector<1x128xf32> to vector<16x128xf32>
    %247 = arith.addf %243, %246 : vector<16x128xf32>
    %c1_98 = arith.constant 1 : index
    %c0_99 = arith.constant 0 : index
    %c0_100 = arith.constant 0 : index
    %248 = vector.load %arg8[%c1_98, %c0_99, %c0_100] : memref<2x1x128xf32, #tpu.memory_space<vmem>>, vector<1x1x128xf32>
    %249 = vector.shape_cast %248 : vector<1x1x128xf32> to vector<1x128xf32>
    %cst_101 = arith.constant 0.000000e+00 : f32
    %250 = vector.broadcast %cst_101 : f32 to vector<16x128xf32>
    %251 = arith.cmpf oge, %247, %250 : vector<16x128xf32>
    %252 = vector.broadcast %249 : vector<1x128xf32> to vector<16x128xf32>
    %253 = arith.mulf %252, %247 : vector<16x128xf32>
    %254 = arith.select %251, %247, %253 : vector<16x128xi1>, vector<16x128xf32>
    %c1_102 = arith.constant 1 : index
    %c0_103 = arith.constant 0 : index
    %c0_104 = arith.constant 0 : index
    %255 = vector.load %arg9[%c1_102, %c0_103, %c0_104] : memref<2x128x32xf32, #tpu.memory_space<vmem>>, vector<1x128x32xf32>
    %256 = vector.shape_cast %255 : vector<1x128x32xf32> to vector<128x32xf32>
    %cst_105 = arith.constant dense<0.000000e+00> : vector<16x32xf32>
    %257 = tpu.matmul %254, %256, %cst_105 {dimension_numbers = #tpu.dot_dimension_numbers<[1], [0], [0], [1], [0, 0, 1, 1], [], []>} : vector<16x128xf32>, vector<128x32xf32>, vector<16x32xf32> -> vector<16x32xf32>
    %c1_106 = arith.constant 1 : index
    %c0_107 = arith.constant 0 : index
    %c0_108 = arith.constant 0 : index
    %258 = vector.load %arg10[%c1_106, %c0_107, %c0_108] : memref<2x1x32xf32, #tpu.memory_space<vmem>>, vector<1x1x32xf32>
    %259 = vector.shape_cast %258 : vector<1x1x32xf32> to vector<1x32xf32>
    %260 = vector.broadcast %259 : vector<1x32xf32> to vector<16x32xf32>
    %261 = arith.addf %257, %260 : vector<16x32xf32>
    %262 = arith.addf %261, %240 : vector<16x32xf32>
    %cst_109 = arith.constant dense<0.000000e+00> : vector<16xf32>
    %263 = vector.multi_reduction <add>, %262, %cst_109 [1] : vector<16x32xf32> to vector<16xf32>
    %264 = vector.shape_cast %263 : vector<16xf32> to vector<16x1xf32>
    %cst_110 = arith.constant 3.200000e+01 : f32
    %265 = vector.broadcast %cst_110 : f32 to vector<16x1xf32>
    %266 = arith.divf %264, %265 : vector<16x1xf32>
    %267 = vector.broadcast %266 : vector<16x1xf32> to vector<16x32xf32>
    %268 = arith.subf %262, %267 : vector<16x32xf32>
    %269 = arith.mulf %268, %268 : vector<16x32xf32>
    %cst_111 = arith.constant dense<0.000000e+00> : vector<16xf32>
    %270 = vector.multi_reduction <add>, %269, %cst_111 [1] : vector<16x32xf32> to vector<16xf32>
    %271 = vector.shape_cast %270 : vector<16xf32> to vector<16x1xf32>
    %cst_112 = arith.constant 3.200000e+01 : f32
    %272 = vector.broadcast %cst_112 : f32 to vector<16x1xf32>
    %273 = arith.divf %271, %272 : vector<16x1xf32>
    %cst_113 = arith.constant 9.99999974E-6 : f32
    %274 = vector.broadcast %cst_113 : f32 to vector<16x1xf32>
    %275 = arith.addf %273, %274 : vector<16x1xf32>
    %276 = math.rsqrt %275 : vector<16x1xf32>
    %277 = vector.broadcast %276 : vector<16x1xf32> to vector<16x32xf32>
    %278 = arith.mulf %268, %277 : vector<16x32xf32>
    %279 = vector.broadcast %218 : vector<1x32xf32> to vector<16x32xf32>
    %280 = arith.mulf %278, %279 : vector<16x32xf32>
    %281 = vector.broadcast %220 : vector<1x32xf32> to vector<16x32xf32>
    %282 = arith.addf %280, %281 : vector<16x32xf32>
    %283 = vector.shape_cast %282 : vector<16x32xf32> to vector<2x8x32xf32>
    %c0_114 = arith.constant 0 : index
    %c0_115 = arith.constant 0 : index
    %c0_116 = arith.constant 0 : index
    %284 = vector.load %arg11[%c0_114, %c0_115, %c0_116] : memref<2x8x32xf32, #tpu.memory_space<vmem>>, vector<2x8x32xf32>
    tpu.vector_store %arg11[%c0_114, %c0_115, %c0_116], %283 {strides = array<i32>} : memref<2x8x32xf32, #tpu.memory_space<vmem>>, vector<2x8x32xf32>,
    return
  }
  func.func @transform_0(%arg0: i32) -> (i32, i32, i32) {
    %c0_i32 = arith.constant 0 : i32
    %c0_i32_0 = arith.constant 0 : i32
    %c0_i32_1 = arith.constant 0 : i32
    return %arg0, %c0_i32, %c0_i32_0 : i32, i32, i32
  }
  func.func @transform_1(%arg0: i32) -> (i32, i32, i32) {
    %c0_i32 = arith.constant 0 : i32
    %c0_i32_0 = arith.constant 0 : i32
    %c0_i32_1 = arith.constant 0 : i32
    return %arg0, %c0_i32, %c0_i32_0 : i32, i32, i32
  }
  func.func @transform_2(%arg0: i32) -> (i32, i32, i32) {
    %c0_i32 = arith.constant 0 : i32
    %c0_i32_0 = arith.constant 0 : i32
    %c0_i32_1 = arith.constant 0 : i32
    %c0_i32_2 = arith.constant 0 : i32
    return %c0_i32, %c0_i32_0, %c0_i32_1 : i32, i32, i32
  }
  func.func @transform_3(%arg0: i32) -> (i32, i32, i32) {
    %c0_i32 = arith.constant 0 : i32
    %c0_i32_0 = arith.constant 0 : i32
    %c0_i32_1 = arith.constant 0 : i32
    %c0_i32_2 = arith.constant 0 : i32
    return %c0_i32, %c0_i32_0, %c0_i32_1 : i32, i32, i32
  }
  func.func @transform_4(%arg0: i32) -> (i32, i32, i32) {
    %c0_i32 = arith.constant 0 : i32
    %c0_i32_0 = arith.constant 0 : i32
    %c0_i32_1 = arith.constant 0 : i32
    %c0_i32_2 = arith.constant 0 : i32
    return %c0_i32, %c0_i32_0, %c0_i32_1 : i32, i32, i32
  }
  func.func @transform_5(%arg0: i32) -> (i32, i32, i32) {
    %c0_i32 = arith.constant 0 : i32
    %c0_i32_0 = arith.constant 0 : i32
    %c0_i32_1 = arith.constant 0 : i32
    %c0_i32_2 = arith.constant 0 : i32
    return %c0_i32, %c0_i32_0, %c0_i32_1 : i32, i32, i32
  }
  func.func @transform_6(%arg0: i32) -> (i32, i32, i32) {
    %c0_i32 = arith.constant 0 : i32
    %c0_i32_0 = arith.constant 0 : i32
    %c0_i32_1 = arith.constant 0 : i32
    %c0_i32_2 = arith.constant 0 : i32
    return %c0_i32, %c0_i32_0, %c0_i32_1 : i32, i32, i32
  }
  func.func @transform_7(%arg0: i32) -> (i32, i32, i32) {
    %c0_i32 = arith.constant 0 : i32
    %c0_i32_0 = arith.constant 0 : i32
    %c0_i32_1 = arith.constant 0 : i32
    %c0_i32_2 = arith.constant 0 : i32
    return %c0_i32, %c0_i32_0, %c0_i32_1 : i32, i32, i32
  }
  func.func @transform_8(%arg0: i32) -> (i32, i32, i32) {
    %c0_i32 = arith.constant 0 : i32
    %c0_i32_0 = arith.constant 0 : i32
    %c0_i32_1 = arith.constant 0 : i32
    %c0_i32_2 = arith.constant 0 : i32
    return %c0_i32, %c0_i32_0, %c0_i32_1 : i32, i32, i32
  }
  func.func @transform_9(%arg0: i32) -> (i32, i32, i32) {
    %c0_i32 = arith.constant 0 : i32
    %c0_i32_0 = arith.constant 0 : i32
    %c0_i32_1 = arith.constant 0 : i32
    %c0_i32_2 = arith.constant 0 : i32
    return %c0_i32, %c0_i32_0, %c0_i32_1 : i32, i32, i32
  }
  func.func @transform_10(%arg0: i32) -> (i32, i32, i32) {
    %c0_i32 = arith.constant 0 : i32
    %c0_i32_0 = arith.constant 0 : i32
    %c0_i32_1 = arith.constant 0 : i32
    return %arg0, %c0_i32, %c0_i32_0 : i32, i32, i32
  }
}

</mosaic_0001>

<bundles_post_ra>
// kernel: tpu_custom_call.1
= control target key start
LH: loop header
LB: loop body
LE: loop exit
PB: predicated region body
PF: predicated region fallthrough
CT: control target
= control target key end

     0   :  { %15 = vsyncpa [#allocation3], 0  ;;  %s3070_s0 = inlined_call_operand.vmem [shape: f32[4,8,32], index: 0, kind: input, shape index: {}]   ;;  %s3071_s1 = inlined_call_operand.vmem [shape: s8[4,8,8], index: 1, kind: input, shape index: {}]   ;;  %s3072_s2 = inlined_call_operand.vmem [shape: f32[2,32,96], index: 2, kind: input, shape index: {}]   ;;  %s3073_s3 = inlined_call_operand.vmem [shape: f32[2,1,32], index: 3, kind: input, shape index: {}]   ;;  %s3074_s4 = inlined_call_operand.vmem [shape: f32[2,1,32], index: 4, kind: input, shape index: {}]   ;;  %s3075_s5 = inlined_call_operand.vmem [shape: f32[2,32,128], index: 5, kind: input, shape index: {}]   ;;  %s3076_s6 = inlined_call_operand.vmem [shape: f32[2,1,128], index: 6, kind: input, shape index: {}]   ;;  %s3077_s7 = inlined_call_operand.vmem [shape: f32[2,1,128], index: 7, kind: input, shape index: {}]   ;;  %s3078_s8 = inlined_call_operand.vmem [shape: f32[2,128,32], index: 8, kind: input, shape index: {}]   ;;  %s3079_s9 = inlined_call_operand.vmem [shape: f32[2,1,32], index: 9, kind: input, shape index: {}]   ;;  %s3080_s10 = inlined_call_operand.hbm [shape: f32[4,8,32], index: 10, kind: output, shape index: {}]  }
   0x1   :  { %17 = vsyncpa [#allocation3 + $0x1], 0  ;;  %s2472_s13 = smov 0   ;;  %s2474_s14 = smov 0  }
   0x2   :  { %s2476_s15 = smov 0   ;;  %s2478_s16 = smov 0  }
   0x3 LB: > { %s2493_s17 = sadd.s32 4294967295, %s2398_s16   ;;  %s2064_s18 = sadd.s32 4294967294, %s2398_s16   ;;  %s2398_s16 = sphi %s2478_s16, %s3121_s16   ;;  %s2394_s15 = sphi %s2476_s15, %s3120_s15   ;;  %s2390_s14 = sphi %s2474_s14, %s3119_s14   ;;  %s2386_s13 = sphi %s2472_s13, %s3118_s13  }
   0x4   : > { %s2497_s19 = sadd.s32 1, %s2398_s16   ;;  %s250_s20 = sadd.s32 1, %s2394_s15 }
   0x5   : > { %s247_s21 = ssub.s32 %s2398_s16, %s2497_s19  ;;  %p260_p0 = scmp.ne.s32.totalorder %s2394_s15, %s2390_s14 }
   0x6   : > { %p248_p1 = scmp.eq.s32.totalorder %s247_s21, 0  ;;  %p261_p2 = scmp.eq.s32.totalorder %s2493_s17, 1 }
   0x7   : > { %p266_p3 = scmp.ne.s32.totalorder %s2390_s14, %s2386_s13  ;;  %p267_p4 = scmp.eq.s32.totalorder %s2064_s18, 1 }
   0x8   : > { %s2508_s22 = scalar_select %p248_p1, %s2394_s15, %s250_s20  }
   0x9   : > { %p2510_p5 = por %p261_p2, %p260_p0  ;;  %p2514_p6 = por %p267_p4, %p266_p3 }
   0xa   : > { %3102 = sst [smem:[#allocation5_spill]] %s2508_s22  ;;  %p2067_p7 = scmp.ge.s32.totalorder %s2398_s16, 1 }
   0xb   : > { %p327_p8 = scmp.lt.s32.totalorder %s2398_s16, 3 }
   0xd   : > { %p328_p9 = pnand %p2067_p7, %p327_p8 }
   0xe   : > { %s2069_s29 = sshll.u32 (!%p328_p9), %s2493_s17, 1  ;;  %s3093_s22 = smov (!%p328_p9), 64  }
   0xf   : > { %331 = sbr.rel (%p328_p9) target bundleno = 4262 (0x10a6), region = 60  ;;  %p371_p10 = scmp.lt.s32.totalorder (!%p328_p9), %s2069_s29, 3 }
  0x10   : > { %s2403_s11 = smov (!%p328_p9), 88   ;;  %s3100_s12 = smov (!%p328_p9), 120  }
  0x11   : > { %s3096_s18 = smov (!%p328_p9), 80   ;;  %s3091_s25 = smov (!%p328_p9), 72  }
  0x12   : > { %s3082_s26 = smov (!%p328_p9), 48   ;;  %s3081_s28 = smov (!%p328_p9), 40  }
  0x14   : > { %v398_v0 = vld [vmem:[%s3072_s2 + $0x18] sm:$0xff]  ;;  %v397_v1 = vld [vmem:[%s3072_s2 + $0x10] sm:$0xff]  ;;  %v396_v2 = vld [vmem:[%s3072_s2 + $0x8] sm:$0xff]  ;;  %s3123_s29 = smov (!%p371_p10, %s2069_s29), 3  ;;  %vm399_vm0 = vcmask 261120   ;;  %v2400_v8 = vmov 0.0  }
  0x15   : > { %418 = vmatpush.msra.mxu0 %v398_v0  ;;  %v395_v3 = vld [vmem:[%s3072_s2] sm:$0xff]  ;;  %s2070_s20 = sshll.u32 %s3123_s29, 3  ;;  %s2072_s21 = sshll.u32 %s3123_s29, 1  ;;  %vm432_vm2 = vcmask 64512   ;;  %vm974_vm4 = vcmask 130048   ;;  %vm977_vm5 = vcmask 195584  }
  0x16   : > { %s374_s27 = scalar_lea.vmem %s3070_s0, %s2070_s20  ;;  %s380_s30 = scalar_lea.vmem %s3071_s1, %s2072_s21 }
  0x17   : > { %419 = vmatpush.msra.mxu0 %v397_v1  ;;  %v2539_v4 = vld [vmem:[%s374_s27] sm:$0xff]  ;;  %v2545_v10 = vld [vmem:[%s374_s27 + $0x8] sm:$0xff]  ;;  %s2402_s29 = smov 96   ;;  %s3094_s20 = smov 112  }
  0x18   : > { %v2165_v5 = vld [vmem:[%s380_s30] sm:$0xf]   ;;  %s3089_s21 = smov 104   ;;  %s3098_s27 = smov 56  }
  0x19   : > { %420 = vmatpush.msra.mxu0 %v396_v2  ;;  %v2167_v6 = vunpack.c.1.s8 %v2165_v5  ;;  %v2166_v21 = vunpack.c.0.s8 %v2165_v5  ;;  %s3087_s30 = smov 8  }
  0x1b   : > { %421 = vmatpush.msra.mxu0 %v395_v3  ;;  %v390_v7 = vcvt.s32.f32 %v2167_v6  ;;  %v389_v22 = vcvt.s32.f32 %v2166_v21 }
  0x1c   : > { %2073 = vmatmul.msk.f32.vlgmr.msra.gmra.mxu0 %vm399_vm0, %v2539_v4 }
  0x1d   : > { %vm392_vm1 = vcmp.eq.f32.partialorder %v390_v7, 0.0  ;;  %vm391_vm3 = vcmp.eq.f32.partialorder %v389_v22, 0.0 }
  0x1e   : > { %v2543_v9 = vsel %vm392_vm1, -1e+30, %v2400_v8  ;;  %v2586_v23 = vsel %vm391_vm3, -1e+30, %v2400_v8 }
  0x24   : > { %2074 = vmatmul.msk.f32.gmra.mxu0 %vm399_vm0, %v2545_v10 }
  0x99   : > { %v2549_v11 = vpop.f32.mrf.mxu0 }
  0x9a   : > { %506 = vrot.lane.b32.xlu2 %v2549_v11, %s3093_s22  ;;  %430 = vrot.lane.b32.xlu0 %v2549_v11, %s2402_s29 }
  0xa1   : > { %v2555_v12 = vpop.f32.mrf.mxu0 }
  0xa2   : > { %588 = vrot.lane.b32.xlu2 %v2555_v12, %s2403_s11  ;;  %458 = vrot.lane.b32.xlu1 %v2555_v12, %s2402_s29 }
  0xaa   : > { %586 = vrot.lane.b32.xlu2 %v2555_v12, %s3100_s12 }
  0xb2   : > { %560 = vrot.lane.b32.xlu2 %v2549_v11, %s2403_s11 }
  0xba   : > { %690 = vrot.lane.b32.xlu2 %v2549_v11, %s3096_s18 }
  0xc2   : > { %558 = vrot.lane.b32.xlu2 %v2549_v11, %s3100_s12  ;;  %s3108_s12 = smov 112  }
  0xca   : > { %688 = vrot.lane.b32.xlu2 %v2549_v11, %s3094_s20 }
  0xd2   : > { %718 = vrot.lane.b32.xlu2 %v2555_v12, %s3096_s18  ;;  %s3105_s18 = smov 120  }
  0xda   : > { %716 = vrot.lane.b32.xlu2 %v2555_v12, %s3094_s20  ;;  %s3107_s20 = smov 80  }
  0xe2   : > { %846 = vrot.lane.b32.xlu2 %v2555_v12, %s3089_s21 }
  0xf4   : > { %v507_v13 = vpop.permute.xlu2 %506 }
  0xfc   : > { %v589_v14 = vpop.permute.xlu2 %588 }
 0x104   : > { %v587_v15 = vpop.permute.xlu2 %586 }
 0x10c   : > { %v431_v16 = vpop.permute.xlu0 %430  ;;  %v561_v17 = vpop.permute.xlu2 %560 }
 0x10d   : > { %2075 = vmatpush.xpose.msk.msra.mxu1 %vm432_vm2, %v431_v16 }
 0x110   : > { %2076 = vmatmul.msk.f32.vlgmr.msra.gmra.mxu1 %vm432_vm2, %v2549_v11 }
 0x111   : > { %2081 = vmatpush.xpose.msk.msrb.mxu1 %vm432_vm2, %v561_v17 }
 0x114   : > { %v691_v18 = vpop.permute.xlu2 %690  ;;  %v459_v19 = vpop.permute.xlu1 %458 }
 0x115   : > { %2077 = vmatpush.xpose.msk.msra.mxu2 %vm432_vm2, %v459_v19 }
 0x118   : > { %2078 = vmatmul.msk.f32.vlgmr.msra.gmra.mxu2 %vm432_vm2, %v2555_v12 }
 0x119   : > { %527 = vmatpush.msrb.mxu2 %v507_v13 }
 0x11b   : > { %2083 = vmatpush.xpose.msk.msra.mxu2 %vm432_vm2, %v589_v14 }
 0x11c   : > { %v559_v20 = vpop.permute.xlu2 %558 }
 0x11d   : > { %2082 = vmatmul.msk.f32.vlgmr.msrb.gmra.mxu1 %vm432_vm2, %v559_v20 }
 0x124   : > { %v689_v30 = vpop.permute.xlu2 %688 }
 0x12c   : > { %v719_v31 = vpop.permute.xlu2 %718 }
 0x12d   : > { %2089 = vmatpush.xpose.msk.msrb.mxu0 %vm432_vm2, %v719_v31 }
 0x134   : > { %v717_v32 = vpop.permute.xlu2 %716 }
 0x135   : > { %2090 = vmatmul.msk.f32.vlgmr.msrb.gmra.mxu0 %vm432_vm2, %v717_v32 }
 0x13c   : > { %v847_v40 = vpop.permute.xlu2 %846 }
 0x18d   : > { %v454_v24 = vpop.f32.mrf.mxu1 }
 0x18e   : > { %v455_v25 = vadd.f32 %v454_v24, %v2586_v23 }
 0x190   : > { %v484_v26 = vsel %vm432_vm2, %v455_v25, -inf }
 0x191   : > { %485 = vmax.xlane.f32.xlu0 %v484_v26 }
 0x19a   : > { %v583_v27 = vpop.f32.mrf.mxu1 }
 0x19b   : > { %v584_v28 = vadd.f32 %v583_v27, %v2586_v23  ;;  %v481_v41 = vpop.f32.mrf.mxu2 }
 0x19c   : > { %v482_v42 = vadd.f32 %v481_v41, %v2543_v9 }
 0x19d   : > { %v614_v29 = vsel %vm432_vm2, %v584_v28, -inf }
 0x19e   : > { %v487_v43 = vsel %vm432_vm2, %v482_v42, -inf }
 0x1a5   : > { %820 = vrot.lane.b32.xlu0 %v2549_v11, %s3091_s25 }
 0x1ad   : > { %848 = vrot.lane.b32.xlu0 %v2555_v12, %s3091_s25  ;;  %s3116_s25 = smov 24  }
 0x1b2   : > { %v741_v54 = vpop.f32.mrf.mxu0 }
 0x1b3   : > { %v742_v3 = vadd.f32 %v741_v54, %v2543_v9 }
 0x1b5   : > { %v747_v7 = vsel %vm432_vm2, %v742_v3, -inf }
 0x1d7   : > { %615 = vmax.xlane.f32.xlu0 %v614_v29 }
 0x204   : > { %v486_v33 = vpop.xlane.xlu0 %485 }
 0x205   : > { %v490_v34 = vsub.f32 %v455_v25, %v486_v33 }
 0x207   : > { %v492_v35 = vmul.f32 1.442695, %v490_v34 }
 0x209   : > { %2254 = vpow2.f32 %v492_v35 }
 0x20f   : > { %v2255_v36 = vpop.eup %2254 }
 0x210   : > { %v496_v37 = vsel %vm432_vm2, %v2255_v36, 0.0 }
 0x211   : > { %497 = vadd.xlane.f32.xlu1 %v496_v37 }
 0x217   : > { %v821_v38 = vpop.permute.xlu0 %820 }
 0x21f   : > { %v849_v39 = vpop.permute.xlu0 %848 }
 0x220   : > { %2095 = vmatpush.xpose.msk.msra.mxu0 %vm432_vm2, %v849_v39 }
 0x223   : > { %2096 = vmatmul.msk.f32.vlgmr.msra.gmra.mxu0 %vm432_vm2, %v847_v40 }
 0x22a   : > { %818 = vrot.lane.b32.xlu1 %v2549_v11, %s3089_s21  ;;  %s3113_s21 = smov 48  }
 0x24a   : > { %v616_v59 = vpop.xlane.xlu0 %615 }
 0x24b   : > { %v620_v63 = vsub.f32 %v584_v28, %v616_v59 }
 0x24d   : > { %v622_v2 = vmul.f32 1.442695, %v620_v63 }
 0x254   : > { %488 = vmax.xlane.f32.xlu1 %v487_v43 }
 0x284   : > { %v498_v44 = vpop.xlane.xlu1 %497 }
 0x285   : > { %2256 = vrcp.f32 %v498_v44 }
 0x28b   : > { %v2257_v45 = vpop.eup %2256 }
 0x28c   : > { %v504_v46 = vmul.f32 %v2257_v45, %v2255_v36 }
 0x28e   : > { %2079 = vmatmul.msk.f32.vlgmr.msrb.gmra.mxu2 %vm432_vm2, %v504_v46 }
 0x28f   : > { %2087 = vmatpush.xpose.msk.msrb.mxu2 %vm432_vm2, %v691_v18 }
 0x296   : > { %2084 = vmatmul.msk.f32.vlgmr.msra.gmra.mxu2 %vm432_vm2, %v587_v15  ;;  %v2224_v15 = vpack.i.bf16 %v2555_v12, %v2549_v11 }
 0x297   : > { %2093 = vmatpush.xpose.msk.msra.mxu2 %vm432_vm2, %v821_v38 }
 0x29c   : > { %v819_v47 = vpop.permute.xlu1 %818 }
 0x29e   : > { %2088 = vmatmul.msk.f32.vlgmr.msrb.gmra.mxu2 %vm432_vm2, %v689_v30 }
 0x2a0   : > { %v871_v58 = vpop.f32.mrf.mxu0 }
 0x2a1   : > { %v872_v60 = vadd.f32 %v871_v58, %v2543_v9 }
 0x2a3   : > { %v877_v1 = vsel %vm432_vm2, %v872_v60, -inf }
 0x2a6   : > { %2094 = vmatmul.msk.f32.vlgmr.msra.gmra.mxu2 %vm432_vm2, %v819_v47 }
 0x2c7   : > { %v489_v48 = vpop.xlane.xlu1 %488 }
 0x2c8   : > { %v491_v49 = vsub.f32 %v482_v42, %v489_v48 }
 0x2ca   : > { %v494_v50 = vmul.f32 1.442695, %v491_v49 }
 0x2cc   : > { %2258 = vpow2.f32 %v494_v50 }
 0x2cd   : > { %2260 = vpow2.f32 %v622_v2 }
 0x2d2   : > { %v2611_v51 = vpop.eup %2258 }
 0x2d3   : > { %v499_v52 = vsel %vm432_vm2, %v2611_v51, 0.0  ;;  %v2261_v13 = vpop.eup %2260 }
 0x2d4   : > { %500 = vadd.xlane.f32.xlu0 %v499_v52  ;;  %v626_v14 = vsel %vm432_vm2, %v2261_v13, 0.0 }
 0x311   : > { %v2615_v53 = vpop.f32.mrf.mxu2 }
 0x319   : > { %v611_v55 = vpop.f32.mrf.mxu2 }
 0x31a   : > { %v612_v56 = vadd.f32 %v611_v55, %v2543_v9 }
 0x31c   : > { %v617_v57 = vsel %vm432_vm2, %v612_v56, -inf }
 0x31d   : > { %618 = vmax.xlane.f32.xlu1 %v617_v57 }
 0x321   : > { %v713_v61 = vpop.f32.mrf.mxu2 }
 0x322   : > { %v714_v62 = vadd.f32 %v713_v61, %v2586_v23 }
 0x324   : > { %v744_v0 = vsel %vm432_vm2, %v714_v62, -inf }
 0x325   : > { %745 = vmax.xlane.f32.xlu2 %v744_v0  ;;  %878 = vmax.xlane.f32.xlu1 %v877_v1 }
 0x329   : > { %v843_v5 = vpop.f32.mrf.mxu2 }
 0x32a   : > { %v844_v6 = vadd.f32 %v843_v5, %v2586_v23 }
 0x32c   : > { %v874_v8 = vsel %vm432_vm2, %v844_v6, -inf }
 0x32d   : > { %748 = vmax.xlane.f32.xlu2 %v747_v7  ;;  %875 = vmax.xlane.f32.xlu0 %v874_v8 }
 0x335   : > { %627 = vadd.xlane.f32.xlu2 %v626_v14 }
 0x33e   : > { %532 = vrot.lane.b32.xlu1 %v2555_v12, %s3093_s22  ;;  %s3115_s22 = smov 16  }
 0x346   : > { %766 = vrot.lane.b32.xlu1 %v2549_v11, %s3082_s26 }
 0x347   : > { %v501_v27 = vpop.xlane.xlu0 %500 }
 0x34d   : > { %2225 = vrot.lane.b32.xlu2 %v2224_v15, %s3098_s27  ;;  %s3109_s27 = smov 64  }
 0x355   : > { %896 = vrot.lane.b32.xlu2 %v2549_v11, %s3081_s28 }
 0x35d   : > { %922 = vrot.lane.b32.xlu2 %v2555_v12, %s3081_s28  ;;  %s3085_s28 = smov 16  }
 0x390   : > { %v619_v16 = vpop.xlane.xlu1 %618 }
 0x391   : > { %v621_v24 = vsub.f32 %v612_v56, %v619_v16 }
 0x393   : > { %v624_v28 = vmul.f32 1.442695, %v621_v24 }
 0x398   : > { %v746_v17 = vpop.xlane.xlu2 %745  ;;  %v879_v18 = vpop.xlane.xlu1 %878 }
 0x399   : > { %v881_v19 = vsub.f32 %v872_v60, %v879_v18  ;;  %v750_v31 = vsub.f32 %v714_v62, %v746_v17 }
 0x39b   : > { %v884_v20 = vmul.f32 1.442695, %v881_v19  ;;  %v752_v34 = vmul.f32 1.442695, %v750_v31 }
 0x39d   : > { %2262 = vpow2.f32 %v884_v20 }
 0x3a0   : > { %v749_v21 = vpop.xlane.xlu2 %748  ;;  %v876_v35 = vpop.xlane.xlu0 %875 }
 0x3a1   : > { %v751_v22 = vsub.f32 %v742_v3, %v749_v21  ;;  %v880_v42 = vsub.f32 %v844_v6, %v876_v35 }
 0x3a3   : > { %v754_v25 = vmul.f32 1.442695, %v751_v22  ;;  %v2639_v26 = vpop.eup %2262  ;;  %v882_v45 = vmul.f32 1.442695, %v880_v42 }
 0x3a4   : > { %v889_v11 = vsel %vm432_vm2, %v2639_v26, 0.0 }
 0x3a5   : > { %2264 = vpow2.f32 %v754_v25  ;;  %890 = vadd.xlane.f32.xlu1 %v889_v11 }
 0x3a6   : > { %2266 = vrcp.f32 %v501_v27 }
 0x3a7   : > { %2268 = vpow2.f32 %v624_v28 }
 0x3a8   : > { %v628_v29 = vpop.xlane.xlu2 %627 }
 0x3a9   : > { %2270 = vrcp.f32 %v628_v29 }
 0x3aa   : > { %2272 = vpow2.f32 %v752_v34 }
 0x3ab   : > { %v2643_v30 = vpop.eup %2264  ;;  %2274 = vpow2.f32 %v882_v45 }
 0x3ac   : > { %v759_v32 = vsel %vm432_vm2, %v2643_v30, 0.0  ;;  %v2267_v33 = vpop.eup %2266 }
 0x3ad   : > { %760 = vadd.xlane.f32.xlu0 %v759_v32  ;;  %v505_v38 = vmul.f32 %v2267_v33, %v2611_v51  ;;  %v2269_v39 = vpop.eup %2268  ;;  %v2415_v33 = vmov 32.0  }
 0x3ae   : > { %v629_v43 = vsel %vm432_vm2, %v2269_v39, 0.0 }
 0x3af   : > { %v2271_v44 = vpop.eup %2270 }
 0x3b0   : > { %v2226_v36 = vpop.permute.xlu2 %2225  ;;  %v533_v37 = vpop.permute.xlu1 %532  ;;  %v634_v48 = vmul.f32 %v2271_v44, %v2261_v13 }
 0x3b1   : > { %v2228_v40 = vunpack.i.h.bf16 %v2226_v36  ;;  %553 = vmatpush.msra.mxu3 %v533_v37  ;;  %v2227_v41 = vunpack.i.l.bf16 %v2226_v36  ;;  %v2273_v49 = vpop.eup %2272 }
 0x3b2   : > { %2080 = vmatmul.msk.f32.vlgmr.msra.gmra.mxu3 %vm432_vm2, %v505_v38  ;;  %v756_v50 = vsel %vm432_vm2, %v2273_v49, 0.0  ;;  %v2275_v51 = vpop.eup %2274 }
 0x3b3   : > { %657 = vmatpush.msrb.mxu3 %v2227_v41  ;;  %683 = vmatpush.msra.mxu1 %v2228_v40  ;;  %v886_v52 = vsel %vm432_vm2, %v2275_v51, 0.0 }
 0x3b5   : > { %630 = vadd.xlane.f32.xlu0 %v629_v43 }
 0x3b8   : > { %v897_v46 = vpop.permute.xlu2 %896  ;;  %v767_v47 = vpop.permute.xlu1 %766 }
 0x3b9   : > { %787 = vmatpush.msra.mxu3 %v767_v47 }
 0x3ba   : > { %2085 = vmatmul.msk.f32.vlgmr.msrb.gmra.mxu3 %vm432_vm2, %v634_v48  ;;  %v1048_v48 = vld [vmem:[%s3075_s5 + $0x18] sm:$0xff] }
 0x3bb   : > { %917 = vmatpush.msrb.mxu3 %v897_v46  ;;  %1071 = vmatpush.msrb.mxu2 %v1048_v48 }
 0x3bd   : > { %757 = vadd.xlane.f32.xlu0 %v756_v50  ;;  %v1046_v50 = vld [vmem:[%s3075_s5 + $0x8] sm:$0xff] }
 0x3c0   : > { %v923_v6 = vpop.permute.xlu2 %922 }
 0x3c5   : > { %887 = vadd.xlane.f32.xlu0 %v886_v52 }
 0x3d9   : > { %792 = vrot.lane.b32.xlu0 %v2555_v12, %s3082_s26  ;;  %s3083_s26 = smov 24  }
 0x418   : > { %v891_v1 = vpop.xlane.xlu1 %890 }
 0x420   : > { %v761_v54 = vpop.xlane.xlu0 %760 }
 0x428   : > { %v631_v55 = vpop.xlane.xlu0 %630 }
 0x429   : > { %2276 = vrcp.f32 %v631_v55 }
 0x42f   : > { %v2277_v56 = vpop.eup %2276 }
 0x430   : > { %v635_v57 = vmul.f32 %v2277_v56, %v2269_v39  ;;  %v758_v58 = vpop.xlane.xlu0 %757  ;;  %v1107_v56 = vld [vmem:[%s3078_s8 + $0x78] sm:$0xff] }
 0x431   : > { %2278 = vrcp.f32 %v758_v58  ;;  %1112 = vmatpush.msrb.mxu0 %v1107_v56  ;;  %v1105_v58 = vld [vmem:[%s3078_s8 + $0x68] sm:$0xff] }
 0x432   : > { %2086 = vmatmul.msk.f32.vlgmr.msra.gmra.mxu1 %vm432_vm2, %v635_v57  ;;  %v1106_v57 = vld [vmem:[%s3078_s8 + $0x70] sm:$0xff] }
 0x433   : > { %1113 = vmatpush.msrb.mxu0 %v1106_v57 }
 0x435   : > { %v555_v59 = vpop.f32.mrf.mxu3  ;;  %1114 = vmatpush.msrb.mxu0 %v1105_v58 }
 0x437   : > { %v2279_v60 = vpop.eup %2278 }
 0x438   : > { %v764_v61 = vmul.f32 %v2279_v60, %v2273_v49  ;;  %v888_v62 = vpop.xlane.xlu0 %887  ;;  %v1047_v49 = vld [vmem:[%s3075_s5 + $0x10] sm:$0xff] }
 0x439   : > { %2280 = vrcp.f32 %v888_v62  ;;  %1072 = vmatpush.msrb.mxu2 %v1047_v49 }
 0x43a   : > { %2091 = vmatmul.msk.f32.vlgmr.msra.gmra.mxu3 %vm432_vm2, %v764_v61  ;;  %2282 = vrcp.f32 %v761_v54  ;;  %v1104_v61 = vld [vmem:[%s3078_s8 + $0x60] sm:$0xff] }
 0x43b   : > { %2284 = vrcp.f32 %v891_v1  ;;  %1073 = vmatpush.msrb.mxu2 %v1046_v50  ;;  %1115 = vmatpush.msrb.mxu0 %v1104_v61 }
 0x43c   : > { %2286 = vrcp.f32 %v2415_v33  ;;  %v1094_v33 = vld [vmem:[%s3078_s8 + $0x10] sm:$0xff] }
 0x43d   : > { %v659_v63 = vpop.f32.mrf.mxu3 }
 0x43e   : > { %950 = vrot.lane.b32.xlu2 %v659_v63, %s3087_s30 }
 0x43f   : > { %v2281_v12 = vpop.eup %2280 }
 0x440   : > { %v894_v0 = vmul.f32 %v2281_v12, %v2275_v51  ;;  %v2283_v2 = vpop.eup %2282  ;;  %v1045_v51 = vld [vmem:[%s3075_s5] sm:$0xff] }
 0x441   : > { %v765_v3 = vmul.f32 %v2283_v2, %v2643_v30  ;;  %v2285_v7 = vpop.eup %2284  ;;  %1074 = vmatpush.msrb.mxu2 %v1045_v51  ;;  %v1102_v2 = vld [vmem:[%s3078_s8 + $0x50] sm:$0xff] }
 0x442   : > { %2097 = vmatmul.msk.f32.vlgmr.msrb.gmra.mxu3 %vm432_vm2, %v894_v0  ;;  %v895_v8 = vmul.f32 %v2285_v7, %v2639_v26  ;;  %v2287_v34 = vpop.eup %2286  ;;  %v1103_v0 = vld [vmem:[%s3078_s8 + $0x58] sm:$0xff]  ;;  %v1100_v7 = vld [vmem:[%s3078_s8 + $0x40] sm:$0xff] }
 0x443   : > { %vm995_vm6 = vweird.f32 %v2287_v34  ;;  %1116 = vmatpush.msrb.mxu0 %v1103_v0  ;;  %v2104_v0 = vld [vmem:[%s3072_s2 + $0x38] sm:$0xff] }
 0x445   : > { %1117 = vmatpush.msrb.mxu0 %v1102_v2  ;;  %v2102_v2 = vld [vmem:[%s3072_s2 + $0x28] sm:$0xff] }
 0x44b   : > { %v793_v5 = vpop.permute.xlu0 %792 }
 0x44c   : > { %813 = vmatpush.msrb.mxu1 %v793_v5  ;;  %v1101_v5 = vld [vmem:[%s3078_s8 + $0x48] sm:$0xff] }
 0x44d   : > { %2092 = vmatmul.msk.f32.vlgmr.msrb.gmra.mxu1 %vm432_vm2, %v765_v3  ;;  %1118 = vmatpush.msrb.mxu0 %v1101_v5 }
 0x44e   : > { %943 = vmatpush.msra.mxu1 %v923_v6 }
 0x44f   : > { %1119 = vmatpush.msrb.mxu0 %v1100_v7 }
 0x450   : > { %1208 = vmatpush.msrb.mxu1 %v2104_v0 }
 0x455   : > { %2098 = vmatmul.msk.f32.vlgmr.msra.gmra.mxu1 %vm432_vm2, %v895_v8 }
 0x498   : > { %v951_v18 = vpop.permute.xlu2 %950 }
 0x499   : > { %v972_v20 = vsel %vm432_vm2, %v2615_v53, %v951_v18  ;;  %v1098_v18 = vld [vmem:[%s3078_s8 + $0x30] sm:$0xff] }
 0x4af   : > { %v685_v14 = vpop.f32.mrf.mxu1 }
 0x4bd   : > { %v789_v13 = vpop.f32.mrf.mxu3 }
 0x4be   : > { %958 = vrot.lane.b32.xlu2 %v789_v13, %s3085_s28 }
 0x4c5   : > { %v919_v15 = vpop.f32.mrf.mxu3 }
 0x4c6   : > { %952 = vrot.lane.b32.xlu2 %v685_v14, %s3087_s30  ;;  %966 = vrot.lane.b32.xlu0 %v919_v15, %s3083_s26  ;;  %v1099_v14 = vld [vmem:[%s3078_s8 + $0x38] sm:$0xff]  ;;  %v2733_v15 = vld [vmem:[%s3073_s3] ss:$0 sm:$0xff]  ;;  %s3114_s30 = smov 40  }
 0x4c7   : > { %1120 = vmatpush.msrb.mxu0 %v1099_v14 }
 0x4c9   : > { %1121 = vmatpush.msrb.mxu0 %v1098_v18 }
 0x4ca   : > { %v815_v16 = vpop.f32.mrf.mxu1 }
 0x4ce   : > { %960 = vrot.lane.b32.xlu0 %v815_v16, %s3085_s28  ;;  %s3112_s28 = smov 8  }
 0x4d2   : > { %v945_v17 = vpop.f32.mrf.mxu1 }
 0x4d3   : > { %968 = vrot.lane.b32.xlu2 %v945_v17, %s3083_s26  ;;  %s3111_s26 = smov 104  }
 0x518   : > { %v959_v19 = vpop.permute.xlu2 %958 }
 0x519   : > { %v975_v21 = vsel %vm974_vm4, %v972_v20, %v959_v19 }
 0x520   : > { %v953_v24 = vpop.permute.xlu2 %952 }
 0x521   : > { %v973_v11 = vsel %vm432_vm2, %v555_v59, %v953_v24 }
 0x52d   : > { %v969_v29 = vpop.permute.xlu2 %968 }
 0x538   : > { %v967_v22 = vpop.permute.xlu0 %966 }
 0x539   : > { %v978_v25 = vsel %vm977_vm5, %v975_v21, %v967_v22  ;;  %v2741_v21 = vld [vmem:[%s3074_s4] ss:$0 sm:$0xff]  ;;  %v1097_v22 = vld [vmem:[%s3078_s8 + $0x28] sm:$0xff] }
 0x53a   : > { %v980_v26 = vadd.f32 %v978_v25, %v2539_v4  ;;  %v991_v4 = vmul.f32 32.0, %v2287_v34  ;;  %1122 = vmatpush.msrb.mxu0 %v1097_v22 }
 0x53c   : > { %v984_v27 = vsel %vm399_vm0, %v980_v26, 0.0  ;;  %v992_v35 = vsub.f32 1.0, %v991_v4  ;;  %v1092_v4 = vld [vmem:[%s3078_s8] sm:$0xff] }
 0x53d   : > { %985 = vadd.xlane.f32.xlu0 %v984_v27 }
 0x53e   : > { %v993_v36 = vmul.f32 %v2287_v34, %v992_v35  ;;  %v2246_v35 = vld [vmem:[%s3076_s6] ss:$0 sm:$0xff] }
 0x540   : > { %v961_v28 = vpop.permute.xlu0 %960  ;;  %v994_v37 = vadd.f32 %v2287_v34, %v993_v36  ;;  %v2247_v36 = vld [vmem:[%s3077_s7] ss:$0 sm:$0xff] }
 0x541   : > { %v976_v30 = vsel %vm974_vm4, %v973_v11, %v961_v28  ;;  %v1095_v28 = vld [vmem:[%s3078_s8 + $0x18] sm:$0xff] }
 0x542   : > { %v979_v31 = vsel %vm977_vm5, %v976_v30, %v969_v29  ;;  %v2679_v38 = vsel %vm995_vm6, %v2287_v34, %v994_v37  ;;  %v1093_v34 = vld [vmem:[%s3078_s8 + $0x8] sm:$0xff] }
 0x543   : > { %v981_v53 = vadd.f32 %v979_v31, %v2545_v10 }
 0x545   : > { %v987_v32 = vsel %vm399_vm0, %v981_v53, 0.0 }
 0x546   : > { %988 = vadd.xlane.f32.xlu1 %v987_v32 }
 0x5b0   : > { %v986_v39 = vpop.xlane.xlu0 %985 }
 0x5b1   : > { %v997_v40 = vmul.f32 %v2679_v38, %v986_v39 }
 0x5b3   : > { %v999_v41 = vsub.f32 %v980_v26, %v997_v40  ;;  %v1096_v26 = vld [vmem:[%s3078_s8 + $0x20] sm:$0xff] }
 0x5b4   : > { %1123 = vmatpush.msrb.mxu0 %v1096_v26 }
 0x5b5   : > { %v1001_v42 = vmul.f32 %v999_v41, %v999_v41 }
 0x5b6   : > { %1124 = vmatpush.msrb.mxu0 %v1095_v28 }
 0x5b7   : > { %v1003_v10 = vsel %vm399_vm0, %v1001_v42, 0.0 }
 0x5b8   : > { %1004 = vadd.xlane.f32.xlu2 %v1003_v10  ;;  %1125 = vmatpush.msrb.mxu0 %v1094_v33 }
 0x5b9   : > { %v989_v43 = vpop.xlane.xlu1 %988 }
 0x5ba   : > { %v998_v44 = vmul.f32 %v2679_v38, %v989_v43  ;;  %1126 = vmatpush.msrb.mxu0 %v1093_v34 }
 0x5bc   : > { %v2684_v45 = vsub.f32 %v981_v53, %v998_v44  ;;  %1127 = vmatpush.msrb.mxu0 %v1092_v4 }
 0x5be   : > { %v1002_v46 = vmul.f32 %v2684_v45, %v2684_v45 }
 0x5c0   : > { %v1006_v47 = vsel %vm399_vm0, %v1002_v46, 0.0 }
 0x5c1   : > { %1007 = vadd.xlane.f32.xlu1 %v1006_v47 }
 0x62b   : > { %v1005_v52 = vpop.xlane.xlu2 %1004 }
 0x62c   : > { %v1009_v54 = vmul.f32 %v1005_v52, %v2679_v38 }
 0x62e   : > { %v1011_v55 = vadd.f32 1e-05, %v1009_v54 }
 0x630   : > { %2288 = vrsqrt.f32 %v1011_v55  ;;  %vm1019_vm8 = vweird.f32 %v1011_v55 }
 0x634   : > { %v1008_v59 = vpop.xlane.xlu1 %1007 }
 0x635   : > { %v1010_v60 = vmul.f32 %v1008_v59, %v2679_v38 }
 0x636   : > { %v2289_v62 = vpop.eup %2288 }
 0x637   : > { %v1014_v63 = vmul.f32 %v2289_v62, %v1011_v55  ;;  %v1012_v12 = vadd.f32 1e-05, %v1010_v60  ;;  %vm1020_vm7 = vweird.f32 %v2289_v62 }
 0x638   : > { %vm1021_vm9 = vmor %vm1019_vm8, %vm1020_vm7 }
 0x639   : > { %v1015_v1 = vmul.f32 %v2289_v62, %v1014_v63  ;;  %2290 = vrsqrt.f32 %v1012_v12  ;;  %vm1029_vm11 = vweird.f32 %v1012_v12 }
 0x63b   : > { %v1016_v3 = vmul.f32 0.5, %v1015_v1  ;;  %v2103_v1 = vld [vmem:[%s3072_s2 + $0x30] sm:$0xff] }
 0x63c   : > { %1209 = vmatpush.msrb.mxu1 %v2103_v1 }
 0x63d   : > { %v1017_v6 = vsub.f32 1.5, %v1016_v3  ;;  %v2101_v3 = vld [vmem:[%s3072_s2 + $0x20] sm:$0xff] }
 0x63e   : > { %1210 = vmatpush.msrb.mxu1 %v2102_v2 }
 0x63f   : > { %v2291_v8 = vpop.eup %2290  ;;  %v1018_v13 = vmul.f32 %v2289_v62, %v1017_v6 }
 0x640   : > { %v1024_v16 = vmul.f32 %v2291_v8, %v1012_v12  ;;  %vm1030_vm10 = vweird.f32 %v2291_v8  ;;  %1211 = vmatpush.msrb.mxu1 %v2101_v3 }
 0x641   : > { %v1022_v17 = vsel %vm1021_vm9, %v2289_v62, %v1018_v13  ;;  %vm1031_vm12 = vmor %vm1029_vm11, %vm1030_vm10 }
 0x642   : > { %v1033_v19 = vmul.f32 %v1022_v17, %v999_v41  ;;  %v1025_v20 = vmul.f32 %v2291_v8, %v1024_v16 }
 0x644   : > { %v1038_v24 = vmul.f32 %v2733_v15, %v1033_v19  ;;  %v1026_v25 = vmul.f32 0.5, %v1025_v20 }
 0x646   : > { %v1027_v27 = vsub.f32 1.5, %v1026_v25  ;;  %v1043_v11 = vadd.f32 %v2741_v21, %v1038_v24 }
 0x648   : > { %v1028_v29 = vmul.f32 %v2291_v8, %v1027_v27  ;;  %2099 = vmatmul.msk.f32.vlgmr.msrb.gmra.mxu2 %vm399_vm0, %v1043_v11 }
 0x64a   : > { %v1032_v30 = vsel %vm1031_vm12, %v2291_v8, %v1028_v29 }
 0x64b   : > { %v1034_v31 = vmul.f32 %v1032_v30, %v2684_v45  ;;  %v2248_v45 = vld [vmem:[%s3079_s9] ss:$0 sm:$0xff] }
 0x64d   : > { %v1039_v53 = vmul.f32 %v2733_v15, %v1034_v31 }
 0x64f   : > { %v1044_v32 = vadd.f32 %v2741_v21, %v1039_v53 }
 0x651   : > { %2100 = vmatmul.msk.f32.gmra.mxu2 %vm399_vm0, %v1044_v32 }
 0x6cb   : > { %v1076_v37 = vpop.f32.mrf.mxu2 }
 0x6cc   : > { %v1077_v39 = vadd.f32 %v2246_v35, %v1076_v37 }
 0x6ce   : > { %vm1083_vm13 = vcmp.ge.f32.partialorder %v1077_v39, 0.0  ;;  %v1088_v40 = vmul.f32 %v2247_v36, %v1077_v39 }
 0x6d0   : > { %v1090_v41 = vsel %vm1083_vm13, %v1077_v39, %v1088_v40 }
 0x6d1   : > { %1128 = vmatmul.f32.vlgmr.msrb.gmra.mxu0 %v1090_v41 }
 0x6d4   : > { %v1079_v42 = vpop.f32.mrf.mxu2 }
 0x6d5   : > { %v1080_v10 = vadd.f32 %v2246_v35, %v1079_v42 }
 0x6d7   : > { %vm1084_vm14 = vcmp.ge.f32.partialorder %v1080_v10, 0.0  ;;  %v1089_v43 = vmul.f32 %v2247_v36, %v1080_v10 }
 0x6d9   : > { %v1091_v44 = vsel %vm1084_vm14, %v1080_v10, %v1089_v43 }
 0x6da   : > { %1131 = vmatmul.f32.gmra.mxu0 %v1091_v44 }
 0x74e   : > { %v1129_v46 = vpop.f32.mrf.mxu0 }
 0x74f   : > { %v1130_v47 = vadd.f32 %v2248_v45, %v1129_v46 }
 0x751   : > { %v1135_v48 = vadd.f32 %v1130_v47, %v1043_v11 }
 0x753   : > { %v1137_v49 = vsel %vm399_vm0, %v1135_v48, 0.0 }
 0x754   : > { %1138 = vadd.xlane.f32.xlu1 %v1137_v49 }
 0x757   : > { %v1132_v50 = vpop.f32.mrf.mxu0 }
 0x758   : > { %v1133_v51 = vadd.f32 %v2248_v45, %v1132_v50 }
 0x75a   : > { %v1136_v52 = vadd.f32 %v1133_v51, %v1044_v32 }
 0x75c   : > { %v1140_v54 = vsel %vm399_vm0, %v1136_v52, 0.0 }
 0x75d   : > { %1141 = vadd.xlane.f32.xlu1 %v1140_v54 }
 0x7c7   : > { %v1139_v55 = vpop.xlane.xlu1 %1138 }
 0x7c8   : > { %v1143_v56 = vmul.f32 %v1139_v55, %v2679_v38 }
 0x7ca   : > { %v1145_v57 = vsub.f32 %v1135_v48, %v1143_v56 }
 0x7cc   : > { %v1147_v58 = vmul.f32 %v1145_v57, %v1145_v57 }
 0x7ce   : > { %v1149_v59 = vsel %vm399_vm0, %v1147_v58, 0.0 }
 0x7cf   : > { %1150 = vadd.xlane.f32.xlu1 %v1149_v59 }
 0x7d0   : > { %v1142_v60 = vpop.xlane.xlu1 %1141 }
 0x7d1   : > { %v1144_v61 = vmul.f32 %v1142_v60, %v2679_v38 }
 0x7d3   : > { %v1146_v62 = vsub.f32 %v1136_v52, %v1144_v61 }
 0x7d5   : > { %v1148_v63 = vmul.f32 %v1146_v62, %v1146_v62 }
 0x7d7   : > { %v1152_v12 = vsel %vm399_vm0, %v1148_v63, 0.0 }
 0x7d8   : > { %1153 = vadd.xlane.f32.xlu0 %v1152_v12 }
 0x842   : > { %v1151_v5 = vpop.xlane.xlu1 %1150 }
 0x843   : > { %v1155_v6 = vmul.f32 %v1151_v5, %v2679_v38 }
 0x845   : > { %v1157_v7 = vadd.f32 1e-05, %v1155_v6 }
 0x847   : > { %2292 = vrsqrt.f32 %v1157_v7  ;;  %vm1165_vm1 = vweird.f32 %v1157_v7 }
 0x84b   : > { %v1154_v8 = vpop.xlane.xlu0 %1153 }
 0x84c   : > { %v1156_v13 = vmul.f32 %v1154_v8, %v2679_v38 }
 0x84d   : > { %v2293_v14 = vpop.eup %2292 }
 0x84e   : > { %v1160_v16 = vmul.f32 %v2293_v14, %v1157_v7  ;;  %v1158_v17 = vadd.f32 1e-05, %v1156_v13  ;;  %vm1166_vm15 = vweird.f32 %v2293_v14 }
 0x84f   : > { %vm1167_vm3 = vmor %vm1165_vm1, %vm1166_vm15 }
 0x850   : > { %v1161_v18 = vmul.f32 %v2293_v14, %v1160_v16  ;;  %2294 = vrsqrt.f32 %v1158_v17  ;;  %vm1175_vm7 = vweird.f32 %v1158_v17 }
 0x852   : > { %v1162_v19 = vmul.f32 0.5, %v1161_v18 }
 0x854   : > { %v1163_v20 = vsub.f32 1.5, %v1162_v19 }
 0x856   : > { %v2295_v22 = vpop.eup %2294  ;;  %v1164_v24 = vmul.f32 %v2293_v14, %v1163_v20 }
 0x857   : > { %v1170_v25 = vmul.f32 %v2295_v22, %v1158_v17  ;;  %vm1176_vm6 = vweird.f32 %v2295_v22 }
 0x858   : > { %v1168_v26 = vsel %vm1167_vm3, %v2293_v14, %v1164_v24  ;;  %vm1177_vm8 = vmor %vm1175_vm7, %vm1176_vm6 }
 0x859   : > { %v1179_v27 = vmul.f32 %v1168_v26, %v1145_v57  ;;  %v1171_v11 = vmul.f32 %v2295_v22, %v1170_v25 }
 0x85b   : > { %v1181_v28 = vmul.f32 %v2733_v15, %v1179_v27  ;;  %v1172_v29 = vmul.f32 0.5, %v1171_v11 }
 0x85d   : > { %v1173_v30 = vsub.f32 1.5, %v1172_v29  ;;  %v2799_v31 = vadd.f32 %v2741_v21, %v1181_v28 }
 0x85f   : > { %v1174_v53 = vmul.f32 %v2295_v22, %v1173_v30  ;;  %2105 = vmatmul.msk.f32.vlgmr.msrb.gmra.mxu1 %vm399_vm0, %v2799_v31 }
 0x861   : > { %v1178_v32 = vsel %vm1177_vm8, %v2295_v22, %v1174_v53 }
 0x862   : > { %v1180_v33 = vmul.f32 %v1178_v32, %v1146_v62 }
 0x864   : > { %v1182_v34 = vmul.f32 %v2733_v15, %v1180_v33 }
 0x866   : > { %v2805_v4 = vadd.f32 %v2741_v21, %v1182_v34 }
 0x868   : > { %2106 = vmatmul.msk.f32.gmra.mxu1 %vm399_vm0, %v2805_v4 }
 0x8dc   : > { %v2809_v35 = vpop.f32.mrf.mxu1 }
 0x8dd   : > { %1349 = vrot.lane.b32.xlu0 %v2809_v35, %s2403_s11  ;;  %1220 = vrot.lane.b32.xlu1 %v2809_v35, %s2402_s29 }
 0x8e5   : > { %1347 = vrot.lane.b32.xlu1 %v2809_v35, %s3105_s18  ;;  %v2817_v36 = vpop.f32.mrf.mxu1 }
 0x8e6   : > { %1247 = vrot.lane.b32.xlu2 %v2817_v36, %s2402_s29  ;;  %s3106_s29 = smov 56   ;;  %v2845_v48 = vpack.i.bf16 %v2817_v36, %v2809_v35 }
 0x940   : > { %v1248_v21 = vpop.permute.xlu2 %1247 }
 0x94f   : > { %v1221_v15 = vpop.permute.xlu1 %1220  ;;  %v1350_v37 = vpop.permute.xlu0 %1349 }
 0x950   : > { %2107 = vmatpush.xpose.msk.msra.mxu1 %vm432_vm2, %v1221_v15 }
 0x953   : > { %2108 = vmatmul.msk.f32.vlgmr.msra.gmra.mxu1 %vm432_vm2, %v2809_v35 }
 0x954   : > { %2109 = vmatpush.xpose.msk.msrb.mxu1 %vm432_vm2, %v1248_v21 }
 0x957   : > { %v1348_v39 = vpop.permute.xlu1 %1347 }
 0x958   : > { %2113 = vmatpush.xpose.msk.msra.mxu1 %vm432_vm2, %v1350_v37 }
 0x95b   : > { %2110 = vmatmul.msk.f32.vlgmr.msrb.gmra.mxu1 %vm432_vm2, %v2817_v36 }
 0x963   : > { %2114 = vmatmul.msk.f32.vlgmr.msra.gmra.mxu1 %vm432_vm2, %v1348_v39 }
 0x9d0   : > { %v1243_v40 = vpop.f32.mrf.mxu1 }
 0x9d1   : > { %v1244_v41 = vadd.f32 %v1243_v40, %v2586_v23 }
 0x9d3   : > { %v1273_v42 = vsel %vm432_vm2, %v1244_v41, -inf }
 0x9d4   : > { %1274 = vmax.xlane.f32.xlu0 %v1273_v42 }
 0x9d8   : > { %v1270_v10 = vpop.f32.mrf.mxu1 }
 0x9d9   : > { %v1271_v43 = vadd.f32 %v1270_v10, %v2543_v9 }
 0x9db   : > { %v1276_v44 = vsel %vm432_vm2, %v1271_v43, -inf }
 0x9dc   : > { %1277 = vmax.xlane.f32.xlu2 %v1276_v44 }
 0x9e0   : > { %v1372_v45 = vpop.f32.mrf.mxu1 }
 0x9e1   : > { %v1373_v46 = vadd.f32 %v1372_v45, %v2586_v23 }
 0x9e3   : > { %v1403_v47 = vsel %vm432_vm2, %v1373_v46, -inf }
 0x9e4   : > { %1404 = vmax.xlane.f32.xlu1 %v1403_v47 }
 0x9e8   : > { %1377 = vrot.lane.b32.xlu0 %v2817_v36, %s2403_s11  ;;  %s3110_s11 = smov 72  }
 0x9f0   : > { %1425 = vrot.lane.b32.xlu0 %v2809_v35, %s3106_s29 }
 0x9f4   : > { %1375 = vrot.lane.b32.xlu2 %v2817_v36, %s3105_s18 }
 0x9f8   : > { %1507 = vrot.lane.b32.xlu0 %v2817_v36, %s3107_s20 }
 0x9fc   : > { %1477 = vrot.lane.b32.xlu2 %v2809_v35, %s3108_s12 }
 0x9fd   : > { %2230 = vrot.lane.b32.xlu1 %v2845_v48, %s3109_s27 }
 0xa00   : > { %1637 = vrot.lane.b32.xlu0 %v2817_v36, %s3110_s11 }
 0xa05   : > { %1479 = vrot.lane.b32.xlu1 %v2809_v35, %s3107_s20 }
 0xa0d   : > { %1505 = vrot.lane.b32.xlu1 %v2817_v36, %s3108_s12 }
 0xa15   : > { %1609 = vrot.lane.b32.xlu1 %v2809_v35, %s3110_s11 }
 0xa47   : > { %v1275_v49 = vpop.xlane.xlu0 %1274 }
 0xa48   : > { %v1279_v50 = vsub.f32 %v1244_v41, %v1275_v49 }
 0xa4a   : > { %v1281_v51 = vmul.f32 1.442695, %v1279_v50 }
 0xa4c   : > { %2296 = vpow2.f32 %v1281_v51 }
 0xa4f   : > { %v1278_v52 = vpop.xlane.xlu2 %1277 }
 0xa50   : > { %v1280_v54 = vsub.f32 %v1271_v43, %v1278_v52 }
 0xa52   : > { %v2297_v55 = vpop.eup %2296  ;;  %v1283_v56 = vmul.f32 1.442695, %v1280_v54 }
 0xa53   : > { %v1285_v57 = vsel %vm432_vm2, %v2297_v55, 0.0 }
 0xa54   : > { %2298 = vpow2.f32 %v1283_v56  ;;  %1286 = vadd.xlane.f32.xlu2 %v1285_v57 }
 0xa57   : > { %v1405_v58 = vpop.xlane.xlu1 %1404  ;;  %v1376_v13 = vpop.permute.xlu2 %1375 }
 0xa58   : > { %v1409_v59 = vsub.f32 %v1373_v46, %v1405_v58 }
 0xa5a   : > { %v2299_v60 = vpop.eup %2298  ;;  %v1411_v61 = vmul.f32 1.442695, %v1409_v59  ;;  %v1378_v0 = vpop.permute.xlu0 %1377 }
 0xa5b   : > { %v1288_v62 = vsel %vm432_vm2, %v2299_v60, 0.0 }
 0xa5c   : > { %2300 = vpow2.f32 %v1411_v61  ;;  %1289 = vadd.xlane.f32.xlu0 %v1288_v62 }
 0xa5f   : > { %v1478_v16 = vpop.permute.xlu2 %1477 }
 0xa62   : > { %v2301_v63 = vpop.eup %2300  ;;  %v1426_v5 = vpop.permute.xlu0 %1425 }
 0xa63   : > { %v1415_v12 = vsel %vm432_vm2, %v2301_v63, 0.0 }
 0xa64   : > { %1416 = vadd.xlane.f32.xlu2 %v1415_v12 }
 0xa6a   : > { %v1508_v14 = vpop.permute.xlu0 %1507 }
 0xa6f   : > { %v2231_v1 = vpop.permute.xlu1 %2230 }
 0xa70   : > { %v2233_v2 = vunpack.i.h.bf16 %v2231_v1  ;;  %v2232_v3 = vunpack.i.l.bf16 %v2231_v1  ;;  %1607 = vrot.lane.b32.xlu0 %v2809_v35, %s3111_s26 }
 0xa72   : > { %1316 = vmatpush.msra.mxu2 %v2232_v3  ;;  %1342 = vmatpush.msra.mxu3 %v2233_v2  ;;  %v1638_v17 = vpop.permute.xlu0 %1637 }
 0xa74   : > { %2115 = vmatpush.xpose.msk.msrb.mxu2 %vm432_vm2, %v1378_v0  ;;  %1446 = vmatpush.msrb.mxu3 %v1426_v5 }
 0xa77   : > { %v1480_v6 = vpop.permute.xlu1 %1479 }
 0xa7c   : > { %1635 = vrot.lane.b32.xlu2 %v2817_v36, %s3111_s26  ;;  %s367_s26 = sand.u32 1, %s2390_s14  }
 0xa7f   : > { %v1506_v7 = vpop.permute.xlu1 %1505 }
 0xa87   : > { %v1610_v8 = vpop.permute.xlu1 %1609 }
 0xa88   : > { %2125 = vmatpush.xpose.msk.msra.mxu0 %vm432_vm2, %v1610_v8 }
 0xac7   : > { %v1287_v18 = vpop.xlane.xlu2 %1286 }
 0xac8   : > { %2302 = vrcp.f32 %v1287_v18 }
 0xace   : > { %v2303_v19 = vpop.eup %2302 }
 0xacf   : > { %v1293_v20 = vmul.f32 %v2303_v19, %v2297_v55  ;;  %v1290_v22 = vpop.xlane.xlu0 %1289 }
 0xad0   : > { %2304 = vrcp.f32 %v1290_v22 }
 0xad1   : > { %2111 = vmatmul.msk.f32.vlgmr.msra.gmra.mxu2 %vm432_vm2, %v1293_v20 }
 0xad2   : > { %2119 = vmatpush.xpose.msk.msra.mxu2 %vm432_vm2, %v1480_v6 }
 0xad6   : > { %v2305_v24 = vpop.eup %2304 }
 0xad7   : > { %v1294_v25 = vmul.f32 %v2305_v24, %v2299_v60  ;;  %v1417_v26 = vpop.xlane.xlu2 %1416 }
 0xad8   : > { %2306 = vrcp.f32 %v1417_v26 }
 0xad9   : > { %2112 = vmatmul.msk.f32.vlgmr.msra.gmra.mxu3 %vm432_vm2, %v1294_v25  ;;  %2116 = vmatmul.msk.f32.vlgmr.msrb.gmra.mxu2 %vm432_vm2, %v1376_v13 }
 0xada   : > { %2121 = vmatpush.xpose.msk.msra.mxu3 %vm432_vm2, %v1508_v14 }
 0xade   : > { %v2307_v27 = vpop.eup %2306 }
 0xadf   : > { %v1423_v11 = vmul.f32 %v2307_v27, %v2301_v63  ;;  %v1636_v29 = vpop.permute.xlu2 %1635 }
 0xae1   : > { %2117 = vmatmul.msk.f32.vlgmr.msrb.gmra.mxu3 %vm432_vm2, %v1423_v11  ;;  %2120 = vmatmul.msk.f32.vlgmr.msra.gmra.mxu2 %vm432_vm2, %v1478_v16 }
 0xae2   : > { %2127 = vmatpush.xpose.msk.msrb.mxu3 %vm432_vm2, %v1638_v17  ;;  %v1608_v28 = vpop.permute.xlu0 %1607 }
 0xae3   : > { %2126 = vmatmul.msk.f32.vlgmr.msra.gmra.mxu0 %vm432_vm2, %v1608_v28 }
 0xae9   : > { %2122 = vmatmul.msk.f32.vlgmr.msra.gmra.mxu3 %vm432_vm2, %v1506_v7 }
 0xaf1   : > { %2128 = vmatmul.msk.f32.vlgmr.msrb.gmra.mxu3 %vm432_vm2, %v1636_v29 }
 0xb54   : > { %v2879_v30 = vpop.f32.mrf.mxu2 }
 0xb5c   : > { %v2881_v53 = vpop.f32.mrf.mxu3  ;;  %v1400_v32 = vpop.f32.mrf.mxu2 }
 0xb5d   : > { %v1401_v33 = vadd.f32 %v1400_v32, %v2543_v9 }
 0xb5f   : > { %v1406_v34 = vsel %vm432_vm2, %v1401_v33, -inf }
 0xb60   : > { %1407 = vmax.xlane.f32.xlu2 %v1406_v34  ;;  %v1632_v35 = vpop.f32.mrf.mxu0 }
 0xb61   : > { %v1633_v15 = vadd.f32 %v1632_v35, %v2586_v23 }
 0xb63   : > { %v1663_v41 = vsel %vm432_vm2, %v1633_v15, -inf }
 0xb64   : > { %v1448_v21 = vpop.f32.mrf.mxu3  ;;  %v1502_v37 = vpop.f32.mrf.mxu2 }
 0xb65   : > { %v1503_v39 = vadd.f32 %v1502_v37, %v2586_v23 }
 0xb67   : > { %v1533_v40 = vsel %vm432_vm2, %v1503_v39, -inf }
 0xb68   : > { %1534 = vmax.xlane.f32.xlu1 %v1533_v40  ;;  %1664 = vmax.xlane.f32.xlu2 %v1663_v41 }
 0xb6c   : > { %v1530_v42 = vpop.f32.mrf.mxu3 }
 0xb6d   : > { %v1531_v10 = vadd.f32 %v1530_v42, %v2543_v9 }
 0xb6f   : > { %v1536_v43 = vsel %vm432_vm2, %v1531_v10, -inf }
 0xb70   : > { %1537 = vmax.xlane.f32.xlu0 %v1536_v43 }
 0xb74   : > { %v1660_v44 = vpop.f32.mrf.mxu3 }
 0xb75   : > { %v1661_v45 = vadd.f32 %v1660_v44, %v2543_v9 }
 0xb77   : > { %v1666_v46 = vsel %vm432_vm2, %v1661_v45, -inf }
 0xb78   : > { %1667 = vmax.xlane.f32.xlu1 %v1666_v46 }
 0xb91   : > { %1451 = vrot.lane.b32.xlu1 %v2817_v36, %s3106_s29 }
 0xb99   : > { %1739 = vrot.lane.b32.xlu1 %v1448_v21, %s3112_s28 }
 0xbd3   : > { %v1408_v23 = vpop.xlane.xlu2 %1407 }
 0xbd4   : > { %v1410_v47 = vsub.f32 %v1401_v33, %v1408_v23 }
 0xbd6   : > { %v1413_v49 = vmul.f32 1.442695, %v1410_v47 }
 0xbd8   : > { %2308 = vpow2.f32 %v1413_v49 }
 0xbdb   : > { %v1665_v50 = vpop.xlane.xlu2 %1664  ;;  %v1535_v51 = vpop.xlane.xlu1 %1534 }
 0xbdc   : > { %v1669_v52 = vsub.f32 %v1633_v15, %v1665_v50  ;;  %v1539_v56 = vsub.f32 %v1503_v39, %v1535_v51 }
 0xbde   : > { %v2309_v54 = vpop.eup %2308  ;;  %v1671_v55 = vmul.f32 1.442695, %v1669_v52  ;;  %v1541_v57 = vmul.f32 1.442695, %v1539_v56 }
 0xbdf   : > { %v1418_v9 = vsel %vm432_vm2, %v2309_v54, 0.0 }
 0xbe0   : > { %1419 = vadd.xlane.f32.xlu0 %v1418_v9  ;;  %2310 = vpow2.f32 %v1671_v55 }
 0xbe1   : > { %2312 = vpow2.f32 %v1541_v57 }
 0xbe3   : > { %v1538_v58 = vpop.xlane.xlu0 %1537 }
 0xbe4   : > { %v1540_v59 = vsub.f32 %v1531_v10, %v1538_v58 }
 0xbe6   : > { %v1543_v36 = vmul.f32 1.442695, %v1540_v59  ;;  %v2311_v60 = vpop.eup %2310 }
 0xbe7   : > { %v1675_v61 = vsel %vm432_vm2, %v2311_v60, 0.0  ;;  %v2313_v12 = vpop.eup %2312 }
 0xbe8   : > { %2314 = vpow2.f32 %v1543_v36  ;;  %1676 = vadd.xlane.f32.xlu2 %v1675_v61  ;;  %v1545_v3 = vsel %vm432_vm2, %v2313_v12, 0.0  ;;  %v2136_v61 = vld [vmem:[%s3075_s5 + $0x38] sm:$0xff] }
 0xbe9   : > { %1855 = vmatpush.msrb.mxu0 %v2136_v61 }
 0xbeb   : > { %v1668_v62 = vpop.xlane.xlu1 %1667 }
 0xbec   : > { %v1670_v63 = vsub.f32 %v1661_v45, %v1668_v62  ;;  %v2135_v62 = vld [vmem:[%s3075_s5 + $0x30] sm:$0xff] }
 0xbed   : > { %1856 = vmatpush.msrb.mxu0 %v2135_v62 }
 0xbee   : > { %v2315_v0 = vpop.eup %2314  ;;  %v1673_v1 = vmul.f32 1.442695, %v1670_v63  ;;  %v2134_v63 = vld [vmem:[%s3075_s5 + $0x28] sm:$0xff] }
 0xbef   : > { %v1548_v2 = vsel %vm432_vm2, %v2315_v0, 0.0  ;;  %1857 = vmatpush.msrb.mxu0 %v2134_v63 }
 0xbf0   : > { %2316 = vpow2.f32 %v1673_v1  ;;  %1549 = vadd.xlane.f32.xlu0 %v1548_v2  ;;  %1546 = vadd.xlane.f32.xlu2 %v1545_v3  ;;  %v2156_v3 = vld [vmem:[%s3078_s8 + $0xf8] sm:$0xff] }
 0xbf1   : > { %1899 = vmatpush.msra.mxu3 %v2156_v3 }
 0xbf6   : > { %v2317_v5 = vpop.eup %2316 }
 0xbf7   : > { %v1678_v6 = vsel %vm432_vm2, %v2317_v5, 0.0 }
 0xbf8   : > { %1679 = vadd.xlane.f32.xlu2 %v1678_v6  ;;  %v2154_v6 = vld [vmem:[%s3078_s8 + $0xe8] sm:$0xff] }
 0xc03   : > { %v1452_v7 = vpop.permute.xlu1 %1451 }
 0xc04   : > { %1472 = vmatpush.msrb.mxu1 %v1452_v7  ;;  %2235 = vrot.lane.b32.xlu0 %v2845_v48, %s3113_s21  ;;  %s2068_s21 = sshll.u32 %s367_s26, 4 }
 0xc0b   : > { %v1740_v41 = vpop.permute.xlu1 %1739 }
 0xc0c   : > { %v1761_v10 = vsel %vm432_vm2, %v2879_v30, %v1740_v41 }
 0xc10   : > { %2240 = vrot.lane.b32.xlu2 %v2845_v48, %s3114_s30  ;;  %s2163_s30 = sshll.u32 %s2493_s17, 4  ;;  %s1975_s17 = scalar_lea.sflag [#allocation3], %s367_s26 }
 0xc11   : > { %s1986_s29 = scalar_lea.hbm %s3080_s10, %s2163_s30 }
 0xc12   : > { %s1989_s12 = sshll.u32 %s1986_s29, 4  ;;  %s1990_s12 = int_to_ptr.hbm [resolvable:$true] %s1989_s12 }
 0xc13   : > { %s2350_s27 = sshra.s32 %s1990_s12, 4  ;;  %s2351_s27 = int_to_ptr.hbm [resolvable:$true] %s2350_s27 }
 0xc14   : > { %s2352_s11 = scalar_lea.hbm %s2351_s27, 16  ;;  %p2357_p0 = scmp.lt.s32.totalorder %s2351_s27, %s3080_s10 }
 0xc15   : > { %p2353_p11 = scmp.ne.s32.totalorder %s2351_s27, %s2352_s11 }
 0xc17   : > { %p2354_p12 = pnand %p2353_p11, %p2510_p5 }
 0xc19   : > { %p2355_p13 = pneg %p2354_p12 }
 0xc53   : > { %v1420_v8 = vpop.xlane.xlu0 %1419 }
 0xc54   : > { %2318 = vrcp.f32 %v1420_v8 }
 0xc5a   : > { %v2319_v13 = vpop.eup %2318 }
 0xc5b   : > { %v1424_v14 = vmul.f32 %v2319_v13, %v2309_v54  ;;  %v1677_v16 = vpop.xlane.xlu2 %1676  ;;  %v2153_v13 = vld [vmem:[%s3078_s8 + $0xe0] sm:$0xff] }
 0xc5d   : > { %2118 = vmatmul.msk.f32.vlgmr.msrb.gmra.mxu1 %vm432_vm2, %v1424_v14 }
 0xc63   : > { %v1547_v17 = vpop.xlane.xlu2 %1546  ;;  %v1550_v18 = vpop.xlane.xlu0 %1549 }
 0xc64   : > { %2320 = vrcp.f32 %v1550_v18  ;;  %v2152_v18 = vld [vmem:[%s3078_s8 + $0xd8] sm:$0xff] }
 0xc65   : > { %2322 = vrcp.f32 %v1547_v17 }
 0xc66   : > { %2324 = vrcp.f32 %v1677_v16 }
 0xc6a   : > { %v2321_v20 = vpop.eup %2320 }
 0xc6b   : > { %v1680_v19 = vpop.xlane.xlu2 %1679  ;;  %v2323_v22 = vpop.eup %2322  ;;  %v1554_v11 = vmul.f32 %v2321_v20, %v2315_v0  ;;  %v2151_v20 = vld [vmem:[%s3078_s8 + $0xd0] sm:$0xff] }
 0xc6c   : > { %2326 = vrcp.f32 %v1680_v19  ;;  %v1553_v27 = vmul.f32 %v2323_v22, %v2313_v12  ;;  %v2325_v32 = vpop.eup %2324  ;;  %v2133_v12 = vld [vmem:[%s3075_s5 + $0x20] sm:$0xff] }
 0xc6d   : > { %v1683_v34 = vmul.f32 %v2325_v32, %v2311_v60  ;;  %1858 = vmatpush.msrb.mxu0 %v2133_v12 }
 0xc72   : > { %v2327_v33 = vpop.eup %2326 }
 0xc73   : > { %v2241_v24 = vpop.permute.xlu2 %2240  ;;  %v1684_v35 = vmul.f32 %v2327_v33, %v2317_v5  ;;  %v2155_v5 = vld [vmem:[%s3078_s8 + $0xf0] sm:$0xff] }
 0xc74   : > { %v2243_v28 = vunpack.i.h.bf16 %v2241_v24  ;;  %v2242_v29 = vunpack.i.l.bf16 %v2241_v24  ;;  %1900 = vmatpush.msra.mxu3 %v2155_v5  ;;  %v2150_v24 = vld [vmem:[%s3078_s8 + $0xc8] sm:$0xff]  ;;  %v2147_v33 = vld [vmem:[%s3078_s8 + $0xb0] sm:$0xff] }
 0xc76   : > { %v2236_v25 = vpop.permute.xlu0 %2235  ;;  %1901 = vmatpush.msra.mxu3 %v2154_v6 }
 0xc77   : > { %v2238_v26 = vunpack.i.h.bf16 %v2236_v25  ;;  %v2237_v48 = vunpack.i.l.bf16 %v2236_v25 }
 0xc78   : > { %1902 = vmatpush.msra.mxu3 %v2153_v13 }
 0xc79   : > { %1576 = vmatpush.msra.mxu1 %v2237_v48  ;;  %1602 = vmatpush.msrb.mxu2 %v2238_v26  ;;  %v2149_v26 = vld [vmem:[%s3078_s8 + $0xc0] sm:$0xff] }
 0xc7a   : > { %2123 = vmatmul.msk.f32.vlgmr.msra.gmra.mxu1 %vm432_vm2, %v1553_v27  ;;  %2124 = vmatmul.msk.f32.vlgmr.msrb.gmra.mxu2 %vm432_vm2, %v1554_v11  ;;  %v2148_v11 = vld [vmem:[%s3078_s8 + $0xb8] sm:$0xff] }
 0xc7b   : > { %1706 = vmatpush.msrb.mxu1 %v2242_v29  ;;  %1732 = vmatpush.msra.mxu2 %v2243_v28  ;;  %v2979_v28 = vld [vmem:[%s3073_s3 + $0x1] ss:$0 sm:$0xff] }
 0xc7c   : > { %1903 = vmatpush.msra.mxu3 %v2152_v18 }
 0xc7e   : > { %1904 = vmatpush.msra.mxu3 %v2151_v20 }
 0xc80   : > { %1905 = vmatpush.msra.mxu3 %v2150_v24 }
 0xc82   : > { %2129 = vmatmul.msk.f32.vlgmr.msrb.gmra.mxu1 %vm432_vm2, %v1683_v34  ;;  %2130 = vmatmul.msk.f32.vlgmr.msra.gmra.mxu2 %vm432_vm2, %v1684_v35 }
 0xc83   : > { %1906 = vmatpush.msra.mxu3 %v2149_v26 }
 0xc85   : > { %1907 = vmatpush.msra.mxu3 %v2148_v11 }
 0xc87   : > { %1908 = vmatpush.msra.mxu3 %v2147_v33 }
 0xcda   : > { %v1474_v15 = vpop.f32.mrf.mxu1 }
 0xcf7   : > { %v1578_v21 = vpop.f32.mrf.mxu1 }
 0xcf8   : > { %1747 = vrot.lane.b32.xlu0 %v1578_v21, %s3115_s22  ;;  %v2146_v21 = vld [vmem:[%s3078_s8 + $0xa8] sm:$0xff] }
 0xcf9   : > { %1909 = vmatpush.msra.mxu3 %v2146_v21 }
 0xcfd   : > { %v1604_v37 = vpop.f32.mrf.mxu2 }
 0xcff   : > { %v1708_v39 = vpop.f32.mrf.mxu1 }
 0xd00   : > { %1741 = vrot.lane.b32.xlu0 %v1474_v15, %s3112_s28  ;;  %1755 = vrot.lane.b32.xlu1 %v1708_v39, %s3116_s25  ;;  %v2987_v15 = vld [vmem:[%s3074_s4 + $0x1] ss:$0 sm:$0xff] }
 0xd05   : > { %v1734_v40 = vpop.f32.mrf.mxu2 }
 0xd06   : > { %1757 = vrot.lane.b32.xlu2 %v1734_v40, %s3116_s25  ;;  %v2145_v40 = vld [vmem:[%s3078_s8 + $0xa0] sm:$0xff]  ;;  %s2356_s25 = scalar_lea.hbm %s3080_s10, 32 }
 0xd07   : > { %1910 = vmatpush.msra.mxu3 %v2145_v40  ;;  %p2358_p1 = scmp.lt.s32.totalorder %s2356_s25, %s2352_s11 }
 0xd08   : > { %1749 = vrot.lane.b32.xlu1 %v1604_v37, %s3115_s22  ;;  %s369_s22 = scalar_lea.vmem [#allocation2], %s2068_s21 }
 0xd09   : > { %s1987_s20 = sshll.u32 %s369_s22, 4  ;;  %p2359_p2 = por %p2358_p1, %p2357_p0  ;;  %s1988_s20 = int_to_ptr.vmem [resolvable:$true] %s1987_s20 }
 0xd0b   : > { %p2360_p3 = pnand %p2359_p2, %p2355_p13 }
 0xd60   : > { %v1758_v51 = vpop.permute.xlu2 %1757 }
 0xd6a   : > { %v1748_v42 = vpop.permute.xlu0 %1747 }
 0xd6b   : > { %v1763_v43 = vsel %vm974_vm4, %v1761_v10, %v1748_v42  ;;  %v2144_v10 = vld [vmem:[%s3078_s8 + $0x98] sm:$0xff] }
 0xd6c   : > { %1911 = vmatpush.msra.mxu3 %v2144_v10 }
 0xd72   : > { %v1756_v44 = vpop.permute.xlu1 %1755  ;;  %v1742_v47 = vpop.permute.xlu0 %1741 }
 0xd73   : > { %v1765_v45 = vsel %vm977_vm5, %v1763_v43, %v1756_v44  ;;  %v1762_v49 = vsel %vm432_vm2, %v2881_v53, %v1742_v47  ;;  %v2143_v47 = vld [vmem:[%s3078_s8 + $0x90] sm:$0xff] }
 0xd74   : > { %v1767_v46 = vadd.f32 %v1765_v45, %v2799_v31  ;;  %1912 = vmatpush.msra.mxu3 %v2143_v47 }
 0xd76   : > { %v1773_v23 = vsel %vm399_vm0, %v1767_v46, 0.0 }
 0xd77   : > { %1774 = vadd.xlane.f32.xlu0 %v1773_v23 }
 0xd7a   : > { %v1750_v50 = vpop.permute.xlu1 %1749 }
 0xd7b   : > { %v1764_v52 = vsel %vm974_vm4, %v1762_v49, %v1750_v50  ;;  %v2142_v49 = vld [vmem:[%s3078_s8 + $0x88] sm:$0xff]  ;;  %v2141_v50 = vld [vmem:[%s3078_s8 + $0x80] sm:$0xff] }
 0xd7c   : > { %v1766_v30 = vsel %vm977_vm5, %v1764_v52, %v1758_v51  ;;  %1913 = vmatpush.msra.mxu3 %v2142_v49  ;;  %v2251_v51 = vld [vmem:[%s3076_s6 + $0x1] ss:$0 sm:$0xff] }
 0xd7d   : > { %v1768_v54 = vadd.f32 %v1766_v30, %v2805_v4  ;;  %v2252_v52 = vld [vmem:[%s3077_s7 + $0x1] ss:$0 sm:$0xff] }
 0xd7e   : > { %1914 = vmatpush.msra.mxu3 %v2141_v50 }
 0xd7f   : > { %v1776_v55 = vsel %vm399_vm0, %v1768_v54, 0.0 }
 0xd80   : > { %1777 = vadd.xlane.f32.xlu1 %v1776_v55 }
 0xdea   : > { %v1775_v56 = vpop.xlane.xlu0 %1774 }
 0xdeb   : > { %v1779_v31 = vmul.f32 %v1775_v56, %v2679_v38 }
 0xded   : > { %v1781_v9 = vsub.f32 %v1767_v46, %v1779_v31 }
 0xdef   : > { %v1783_v57 = vmul.f32 %v1781_v9, %v1781_v9 }
 0xdf1   : > { %v1785_v58 = vsel %vm399_vm0, %v1783_v57, 0.0 }
 0xdf2   : > { %1786 = vadd.xlane.f32.xlu2 %v1785_v58 }
 0xdf3   : > { %v1778_v53 = vpop.xlane.xlu1 %1777 }
 0xdf4   : > { %v1780_v59 = vmul.f32 %v1778_v53, %v2679_v38  ;;  %v2253_v53 = vld [vmem:[%s3079_s9 + $0x1] ss:$0 sm:$0xff] }
 0xdf6   : > { %v2930_v36 = vsub.f32 %v1768_v54, %v1780_v59 }
 0xdf8   : > { %v1784_v60 = vmul.f32 %v2930_v36, %v2930_v36 }
 0xdfa   : > { %v1788_v4 = vsel %vm399_vm0, %v1784_v60, 0.0 }
 0xdfb   : > { %1789 = vadd.xlane.f32.xlu0 %v1788_v4 }
 0xe65   : > { %v1787_v0 = vpop.xlane.xlu2 %1786 }
 0xe66   : > { %v1791_v1 = vmul.f32 %v1787_v0, %v2679_v38 }
 0xe68   : > { %v1793_v2 = vadd.f32 1e-05, %v1791_v1 }
 0xe6a   : > { %2328 = vrsqrt.f32 %v1793_v2  ;;  %vm1801_vm4 = vweird.f32 %v1793_v2 }
 0xe6e   : > { %v1790_v7 = vpop.xlane.xlu0 %1789 }
 0xe6f   : > { %v1792_v8 = vmul.f32 %v1790_v7, %v2679_v38 }
 0xe70   : > { %v2329_v14 = vpop.eup %2328 }
 0xe71   : > { %v1796_v16 = vmul.f32 %v2329_v14, %v1793_v2  ;;  %v1794_v17 = vadd.f32 1e-05, %v1792_v8  ;;  %vm1802_vm2 = vweird.f32 %v2329_v14 }
 0xe72   : > { %vm1803_vm5 = vmor %vm1801_vm4, %vm1802_vm2 }
 0xe73   : > { %v1797_v19 = vmul.f32 %v2329_v14, %v1796_v16  ;;  %2330 = vrsqrt.f32 %v1794_v17  ;;  %vm1811_vm10 = vweird.f32 %v1794_v17 }
 0xe75   : > { %v1798_v22 = vmul.f32 0.5, %v1797_v19 }
 0xe77   : > { %v1799_v25 = vsub.f32 1.5, %v1798_v22 }
 0xe79   : > { %v2331_v48 = vpop.eup %2330  ;;  %v1800_v27 = vmul.f32 %v2329_v14, %v1799_v25 }
 0xe7a   : > { %v1806_v29 = vmul.f32 %v2331_v48, %v1794_v17  ;;  %vm1812_vm9 = vweird.f32 %v2331_v48 }
 0xe7b   : > { %v1804_v32 = vsel %vm1803_vm5, %v2329_v14, %v1800_v27  ;;  %vm1813_vm11 = vmor %vm1811_vm10, %vm1812_vm9 }
 0xe7c   : > { %v1815_v34 = vmul.f32 %v1804_v32, %v1781_v9  ;;  %v1807_v35 = vmul.f32 %v2331_v48, %v1806_v29 }
 0xe7e   : > { %v1820_v37 = vmul.f32 %v2979_v28, %v1815_v34  ;;  %v1808_v39 = vmul.f32 0.5, %v1807_v35 }
 0xe80   : > { %v1809_v41 = vsub.f32 1.5, %v1808_v39  ;;  %v1825_v42 = vadd.f32 %v2987_v15, %v1820_v37 }
 0xe82   : > { %v1810_v43 = vmul.f32 %v2331_v48, %v1809_v41  ;;  %2138 = vmatmul.msk.f32.vlgmr.msrb.gmra.mxu0 %vm399_vm0, %v1825_v42 }
 0xe84   : > { %v1814_v44 = vsel %vm1813_vm11, %v2331_v48, %v1810_v43 }
 0xe85   : > { %v1816_v45 = vmul.f32 %v1814_v44, %v2930_v36 }
 0xe87   : > { %v1821_v46 = vmul.f32 %v2979_v28, %v1816_v45 }
 0xe89   : > { %v1826_v23 = vadd.f32 %v2987_v15, %v1821_v46 }
 0xe8b   : > { %2139 = vmatmul.msk.f32.gmra.mxu0 %vm399_vm0, %v1826_v23 }
 0xeff   : > { %v1860_v30 = vpop.f32.mrf.mxu0 }
 0xf00   : > { %v1861_v54 = vadd.f32 %v2251_v51, %v1860_v30 }
 0xf02   : > { %vm1868_vm12 = vcmp.ge.f32.partialorder %v1861_v54, 0.0  ;;  %v1873_v55 = vmul.f32 %v2252_v52, %v1861_v54 }
 0xf04   : > { %v1875_v56 = vsel %vm1868_vm12, %v1861_v54, %v1873_v55 }
 0xf05   : > { %1915 = vmatmul.f32.vlgmr.msra.gmra.mxu3 %v1875_v56 }
 0xf08   : > { %v1863_v31 = vpop.f32.mrf.mxu0 }
 0xf09   : > { %v1864_v9 = vadd.f32 %v2251_v51, %v1863_v31 }
 0xf0b   : > { %vm1869_vm13 = vcmp.ge.f32.partialorder %v1864_v9, 0.0  ;;  %v1874_v57 = vmul.f32 %v2252_v52, %v1864_v9 }
 0xf0d   : > { %v1876_v58 = vsel %vm1869_vm13, %v1864_v9, %v1874_v57 }
 0xf0e   : > { %1918 = vmatmul.f32.gmra.mxu3 %v1876_v58 }
 0xf88   : > { %v1916_v59 = vpop.f32.mrf.mxu3 }
 0xf89   : > { %v1917_v36 = vadd.f32 %v2253_v53, %v1916_v59 }
 0xf8b   : > { %v1922_v60 = vadd.f32 %v1917_v36, %v1825_v42 }
 0xf8d   : > { %v1924_v4 = vsel %vm399_vm0, %v1922_v60, 0.0 }
 0xf8e   : > { %1925 = vadd.xlane.f32.xlu1 %v1924_v4 }
 0xf91   : > { %v1919_v61 = vpop.f32.mrf.mxu3 }
 0xf92   : > { %v1920_v62 = vadd.f32 %v2253_v53, %v1919_v61 }
 0xf94   : > { %v1923_v63 = vadd.f32 %v1920_v62, %v1826_v23 }
 0xf96   : > { %v1927_v12 = vsel %vm399_vm0, %v1923_v63, 0.0 }
 0xf97   : > { %1928 = vadd.xlane.f32.xlu2 %v1927_v12 }
0x1001   : > { %v1926_v0 = vpop.xlane.xlu1 %1925 }
0x1002   : > { %v1930_v1 = vmul.f32 %v1926_v0, %v2679_v38 }
0x1004   : > { %v1932_v2 = vsub.f32 %v1922_v60, %v1930_v1 }
0x1006   : > { %v1934_v3 = vmul.f32 %v1932_v2, %v1932_v2 }
0x1008   : > { %v1936_v5 = vsel %vm399_vm0, %v1934_v3, 0.0 }
0x1009   : > { %1937 = vadd.xlane.f32.xlu0 %v1936_v5 }
0x100a   : > { %v1929_v6 = vpop.xlane.xlu2 %1928 }
0x100b   : > { %v1931_v7 = vmul.f32 %v1929_v6, %v2679_v38 }
0x100d   : > { %v1933_v8 = vsub.f32 %v1923_v63, %v1931_v7 }
0x100f   : > { %v1935_v13 = vmul.f32 %v1933_v8, %v1933_v8 }
0x1011   : > { %v1939_v14 = vsel %vm399_vm0, %v1935_v13, 0.0 }
0x1012   : > { %1940 = vadd.xlane.f32.xlu1 %v1939_v14 }
0x107c   : > { %v1938_v16 = vpop.xlane.xlu0 %1937 }
0x107d   : > { %v1942_v17 = vmul.f32 %v1938_v16, %v2679_v38 }
0x107f   : > { %v1944_v18 = vadd.f32 1e-05, %v1942_v17 }
0x1081   : > { %2332 = vrsqrt.f32 %v1944_v18  ;;  %vm1952_vm15 = vweird.f32 %v1944_v18 }
0x1085   : > { %v1941_v19 = vpop.xlane.xlu1 %1940 }
0x1086   : > { %v1943_v20 = vmul.f32 %v1941_v19, %v2679_v38 }
0x1087   : > { %v2333_v22 = vpop.eup %2332 }
0x1088   : > { %v1947_v24 = vmul.f32 %v2333_v22, %v1944_v18  ;;  %v1945_v25 = vadd.f32 1e-05, %v1943_v20  ;;  %vm1953_vm14 = vweird.f32 %v2333_v22 }
0x1089   : > { %vm1954_vm1 = vmor %vm1952_vm15, %vm1953_vm14 }
0x108a   : > { %v1948_v26 = vmul.f32 %v2333_v22, %v1947_v24  ;;  %2334 = vrsqrt.f32 %v1945_v25  ;;  %vm1962_vm6 = vweird.f32 %v1945_v25 }
0x108c   : > { %v1949_v48 = vmul.f32 0.5, %v1948_v26 }
0x108e   : > { %v1950_v27 = vsub.f32 1.5, %v1949_v48 }
0x1090   : > { %v2335_v11 = vpop.eup %2334  ;;  %v1951_v29 = vmul.f32 %v2333_v22, %v1950_v27 }
0x1091   : > { %v1957_v32 = vmul.f32 %v2335_v11, %v1945_v25  ;;  %vm1963_vm3 = vweird.f32 %v2335_v11 }
0x1092   : > { %v1955_v33 = vsel %vm1954_vm1, %v2333_v22, %v1951_v29  ;;  %vm1964_vm7 = vmor %vm1962_vm6, %vm1963_vm3 }
0x1093   : > { %v1966_v34 = vmul.f32 %v1955_v33, %v1932_v2  ;;  %v1958_v35 = vmul.f32 %v2335_v11, %v1957_v32 }
0x1095   : > { %v1968_v38 = vmul.f32 %v2979_v28, %v1966_v34  ;;  %v1959_v21 = vmul.f32 0.5, %v1958_v35 }
0x1097   : > { %v1970_v37 = vadd.f32 %v2987_v15, %v1968_v38  ;;  %v1960_v39 = vsub.f32 1.5, %v1959_v21 }
0x1099   : > { %v1961_v40 = vmul.f32 %v2335_v11, %v1960_v39  ;;  %1972 = vst.msk [vmem:[%s369_s22] sm:$0xff] %vm399_vm0, %v1970_v37 }
0x109b   : > { %v1965_v41 = vsel %vm1964_vm7, %v2335_v11, %v1961_v40 }
0x109c   : > { %v1967_v42 = vmul.f32 %v1965_v41, %v1933_v8 }
0x109e   : > { %v1969_v10 = vmul.f32 %v2979_v28, %v1967_v42 }
0x10a0   : > { %v1971_v43 = vadd.f32 %v2987_v15, %v1969_v10 }
0x10a2   : > { %1973 = vst.msk [vmem:[%s369_s22 + $0x8] sm:$0xff] %vm399_vm0, %v1971_v43 }
0x10a3   : > { %2363 = shalt.err (!%p2360_p3)
}
0x10a4   : > { %s2416_s26 = smov 128  }
0x10a5   : > { %2168 = dma.vmem_to_hbm [thread:$0]  (%p2510_p5), %s1988_s20, 256, %s1990_s12, %s1975_s17, %s2416_s26, %s2416_s26, %s3112_s28  }
0x10a6 PF: > { %p2174_p4 = scmp.ge.s32.totalorder %s2398_s16, 2  ;;  %s2004_s22 = sand.u32 1, %s2386_s13  }
0x10a7   : > { %s2005_s21 = scalar_lea.sflag [#allocation3], %s2004_s22 }
0x10a8   : > { %p2171_p7 = pnand %p2174_p4, %p2514_p6 }
0x10aa   : > { %p2172_p8 = pneg %p2171_p7 }
0x10ac   : > { %2381 = dma.done.wait (%p2172_p8), %s2005_s21, 256  }
0x10ad   : > { %2383 = vsyncadd (%p2172_p8), %s2005_s21, 4294967040  ;;  %s3117_s27 = sld [smem:[#allocation5_spill]]  ;;  %p20_p9 = scmp.ge.s32.totalorder %s2497_s19, 4  }
0x10ae   : > { %s3118_s13 = smov %s2390_s14  ;;  %s3119_s14 = smov %s2394_s15 }
0x10af   : > { %s3121_s16 = smov %s2497_s19  ;;  %22 = sbr.rel (!%p20_p9) target bundleno = 3 (0x3), region = 106 }
0x10b3   : > { %s3120_s15 = smov %s3117_s27 }
0x10b4   :  { %2011 = vsyncpa [#allocation3], 1 }
0x10b5   :  { %2013 = vsyncpa [#allocation3 + $0x1], 1 }

</bundles_post_ra>
